<compile_context>
chip_gen: v5e
topology: v5e:2x2
jax: 0.10.0
libtpu: 0.0.40
codegen_flags: <defaults>
</compile_context>

<pallas_src>
import functools

import jax
import jax.numpy as jnp
from jax.experimental import pallas as pl
from jax.experimental.pallas import tpu as pltpu

C1P = 8      # conv1 out-channels (2) padded to one sublane tile
C2P = 8      # conv2 out-channels (5) padded
S1 = 800     # 4 pooling quadrants x (196 pooled pixels padded to 200)
S2 = 196     # 14*14 pooled pixels
MARGIN = 16  # zero margin for conv2's shifted reads (max |shift| = 15)
BN_EPS = 1e-5


# ------------------------------ Pallas kernel ------------------------------

def _netc_kernel(colsT_ref, colmask_ref, mask_ref,
                 w1_ref, b1_ref, g1_ref, be1_ref,
                 w2_ref, b2_ref, wfc1_ref, bfc1_ref, wfc2_ref, bfc2_ref,
                 out_ref, sum_ref, sumsq_ref, pad_ref, *, batch):
    phase = pl.program_id(0)
    img = pl.program_id(1)

    # conv1 for this image: (C1P, 9) @ (9, 800) -> (C1P, 800), f32 accumulate.
    cols = colsT_ref[0]                                       # (9, S1) bf16
    z1 = jnp.dot(w1_ref[...], cols,
                 preferred_element_type=jnp.float32) + b1_ref[...]

    @pl.when(jnp.logical_and(phase == 0, img == 0))
    def _init_stats():
        sum_ref[...] = jnp.zeros_like(sum_ref)
        sumsq_ref[...] = jnp.zeros_like(sumsq_ref)

    @pl.when(phase == 0)
    def _accumulate_stats():
        # colmask zeroes the 4x4 padded pixel columns so they do not bias the
        # batch statistics (they carry the conv bias otherwise).
        zm = z1 * colmask_ref[...]
        sum_ref[...] += jnp.sum(zm, axis=1, keepdims=True)
        sumsq_ref[...] += jnp.sum(zm * zm, axis=1, keepdims=True)

    @pl.when(phase == 1)
    def _forward():
        # ---- BatchNorm (training-mode batch statistics) + ReLU ----
        inv_count = 1.0 / float(batch * 784)
        mean = sum_ref[...] * inv_count                       # (C1P, 1)
        var = jnp.maximum(sumsq_ref[...] * inv_count - mean * mean, 0.0)
        scale = jax.lax.rsqrt(var + BN_EPS) * g1_ref[...]
        y1 = jnp.maximum((z1 - mean) * scale + be1_ref[...], 0.0)   # (C1P, S1)

        # ---- 2x2 max-pool: quadrant g lives in lanes [g*200, g*200+196) ----
        p = jnp.maximum(jnp.maximum(y1[:, 0:196], y1[:, 200:396]),
                        jnp.maximum(y1[:, 400:596], y1[:, 600:796]))  # (C1P,196)

        # ---- conv2 (3x3, pad 1) via 9 shifted reads of a zero-margin buffer
        pad_ref[...] = jnp.zeros_like(pad_ref)
        pad_ref[:, MARGIN:MARGIN + S2] = p
        acc2 = b2_ref[...]                                    # (C2P, 1)
        for t in range(9):
            ty, tx = t // 3, t % 3
            shift = (ty - 1) * 14 + (tx - 1)
            tap = pad_ref[:, MARGIN + shift:MARGIN + shift + S2]   # (C1P, S2)
            tap = tap * mask_ref[t:t + 1, :]                  # zero invalid taps
            acc2 = acc2 + jnp.dot(w2_ref[t], tap.astype(jnp.bfloat16),
                                  preferred_element_type=jnp.float32)
        z2 = jnp.maximum(acc2, 0.0)                           # (C2P, S2)

        # ---- fc1 over the PyTorch NCHW flatten order (feature = c*196 + s)
        h1 = bfc1_ref[...]                                    # (1, 100)
        for c in range(5):
            h1 = h1 + jnp.dot(z2[c:c + 1, :].astype(jnp.bfloat16), wfc1_ref[c],
                              preferred_element_type=jnp.float32)

        # ---- fc2 + softmax (dim = classes) ----
        logits = jnp.dot(h1.astype(jnp.bfloat16), wfc2_ref[...],
                         preferred_element_type=jnp.float32) + bfc2_ref[...]
        m = jnp.max(logits, axis=-1, keepdims=True)
        e = jnp.exp(logits - m)
        probs = e / jnp.sum(e, axis=-1, keepdims=True)
        out_ref[...] = probs.reshape(1, 1, 10)


# --------------------------- wrapper-side helpers ---------------------------

def _im2col_quadrants(x):
    """x: (B, 28, 28) f32 -> (B, 9, 800) conv1 patches, transposed layout.

    Feature axis f = ky*3 + kx.  Pixel axis = quadrant*200 + i*14 + j, where
    the conv1 output pixel is (h, w) = (2i+dy, 2j+dx) and quadrant = dy*2+dx,
    so the 2x2 max-pool becomes a max over 4 contiguous lane slices.  The 4
    extra columns per quadrant are zero padding.
    """
    B = x.shape[0]
    xp = jnp.pad(x, ((0, 0), (1, 1), (1, 1)))
    taps = [xp[:, ky:ky + 28, kx:kx + 28] for ky in range(3) for kx in range(3)]
    pat = jnp.stack(taps, axis=1)                      # (B, 9, 28, 28)
    pat = pat.reshape(B, 9, 14, 2, 14, 2)              # h = 2i+dy, w = 2j+dx
    pat = jnp.transpose(pat, (0, 1, 3, 5, 2, 4))       # (B, 9, dy, dx, i, j)
    pat = pat.reshape(B, 9, 4, S2)
    pat = jnp.pad(pat, ((0, 0), (0, 0), (0, 0), (0, 4)))
    return pat.reshape(B, 9, S1)


def _conv2_tap_masks():
    """(9, 196) f32: 1 where the 3x3 tap (dy,dx) is inside the 14x14 grid."""
    ii = jnp.arange(14).reshape(14, 1)
    jj = jnp.arange(14).reshape(1, 14)
    rows = []
    for ty in range(3):
        for tx in range(3):
            ok = ((ii + ty - 1 >= 0) & (ii + ty - 1 < 14) &
                  (jj + tx - 1 >= 0) & (jj + tx - 1 < 14))
            rows.append(ok.reshape(1, S2))
    return jnp.concatenate(rows, axis=0).astype(jnp.float32)


def _valid_column_mask():
    """(1, 800) f32: 1 for real pixels, 0 for the per-quadrant padding."""
    lane_valid = (jnp.arange(200) < S2).astype(jnp.float32)
    return jnp.tile(lane_valid, 4).reshape(1, S1)


def init_params(key):
    """Raw parameters in PyTorch layout (what the nn.Module would hold)."""
    ks = jax.random.split(key, 8)

    def u(k, shape, fan_in):
        b = 1.0 / (fan_in ** 0.5)
        return jax.random.uniform(k, shape, jnp.float32, -b, b)

    return {
        "conv1_w": u(ks[0], (2, 1, 3, 3), 9),
        "conv1_b": u(ks[1], (2,), 9),
        "bn1_g": jnp.ones((2,), jnp.float32),
        "bn1_b": jnp.zeros((2,), jnp.float32),
        "conv2_w": u(ks[2], (5, 2, 3, 3), 18),
        "conv2_b": u(ks[3], (5,), 18),
        "fc1_w": u(ks[4], (100, 5 * 14 * 14), 980),
        "fc1_b": u(ks[5], (100,), 980),
        "fc2_w": u(ks[6], (10, 100), 100),
        "fc2_b": u(ks[7], (10,), 100),
    }


def prepare_params(raw):
    """One-time re-layout of the weights into kernel-ready form (hoisted out of
    the forward): conv channels padded to 8, MXU operands cast to bf16."""
    f32, bf16 = jnp.float32, jnp.bfloat16
    w1 = raw["conv1_w"].reshape(2, 9)                                # (co, f)
    w1pT = jnp.zeros((C1P, 9), f32).at[:2].set(w1).astype(bf16)
    b1 = jnp.zeros((C1P, 1), f32).at[:2, 0].set(raw["conv1_b"])
    g1 = jnp.zeros((C1P, 1), f32).at[:2, 0].set(raw["bn1_g"])
    be1 = jnp.zeros((C1P, 1), f32).at[:2, 0].set(raw["bn1_b"])
    w2 = jnp.transpose(raw["conv2_w"], (2, 3, 0, 1)).reshape(9, 5, 2)  # (t,co,ci)
    w2pT = jnp.zeros((9, C2P, C1P), f32).at[:, :5, :2].set(w2).astype(bf16)
    b2 = jnp.zeros((C2P, 1), f32).at[:5, 0].set(raw["conv2_b"])
    wfc1 = jnp.transpose(raw["fc1_w"].reshape(100, 5, S2), (1, 2, 0)).astype(bf16)
    bfc1 = raw["fc1_b"].reshape(1, 100).astype(f32)
    wfc2 = raw["fc2_w"].T.astype(bf16)                               # (100, 10)
    bfc2 = raw["fc2_b"].reshape(1, 10).astype(f32)
    return {"w1": w1pT, "b1": b1, "g1": g1, "be1": be1,
            "w2": w2pT, "b2": b2, "wfc1": wfc1, "bfc1": bfc1,
            "wfc2": wfc2, "bfc2": bfc2,
            "mask": _conv2_tap_masks(), "colmask": _valid_column_mask()}


@jax.jit
def netc_forward(prep, images, labels=None):
    """images: (B, 1, 28, 28) NCHW as in PyTorch; labels unused (matches ref)."""
    del labels
    B = images.shape[0]
    x = images.astype(jnp.float32).reshape(B, 28, 28)
    colsT = _im2col_quadrants(x).astype(jnp.bfloat16)                # (B, 9, 800)

    const2 = lambda p, b: (0, 0)
    const3 = lambda p, b: (0, 0, 0)
    out = pl.pallas_call(
        functools.partial(_netc_kernel, batch=B),
        out_shape=jax.ShapeDtypeStruct((B, 1, 10), jnp.float32),
        grid_spec=pltpu.PrefetchScalarGridSpec(
            num_scalar_prefetch=0,
            grid=(2, B),                 # (phase: 0 = BN stats, 1 = forward; image)
            in_specs=[
                pl.BlockSpec((1, 9, S1), lambda p, b: (b, 0, 0)),   # conv1 patches
                pl.BlockSpec((1, S1), const2),                      # valid-pixel mask
                pl.BlockSpec((9, S2), const2),                      # conv2 tap masks
                pl.BlockSpec((C1P, 9), const2),                     # conv1 weight
                pl.BlockSpec((C1P, 1), const2),                     # conv1 bias
                pl.BlockSpec((C1P, 1), const2),                     # bn gamma
                pl.BlockSpec((C1P, 1), const2),                     # bn beta
                pl.BlockSpec((9, C2P, C1P), const3),                # conv2 weight
                pl.BlockSpec((C2P, 1), const2),                     # conv2 bias
                pl.BlockSpec((5, S2, 100), const3),                 # fc1 weight
                pl.BlockSpec((1, 100), const2),                     # fc1 bias
                pl.BlockSpec((100, 10), const2),                    # fc2 weight
                pl.BlockSpec((1, 10), const2),                      # fc2 bias
            ],
            out_specs=pl.BlockSpec((1, 1, 10), lambda p, b: (b, 0, 0)),
            scratch_shapes=[
                pltpu.VMEM((C1P, 1), jnp.float32),                  # BN sum
                pltpu.VMEM((C1P, 1), jnp.float32),                  # BN sum of squares
                pltpu.VMEM((C1P, MARGIN + S2 + MARGIN), jnp.float32),  # conv2 margin buf
            ],
        ),
        compiler_params=pltpu.CompilerParams(
            # Both axes are sequential: global BN batch stats must be complete
            # before phase 1 normalizes, so no "parallel" sharding here.
            dimension_semantics=("arbitrary", "arbitrary"),
            vmem_limit_bytes=32 * 1024 * 1024,
        ),
    )(colsT, prep["colmask"], prep["mask"], prep["w1"], prep["b1"], prep["g1"],
      prep["be1"], prep["w2"], prep["b2"], prep["wfc1"], prep["bfc1"],
      prep["wfc2"], prep["bfc2"])
    return out[:, 0, :]


# ------------------------------ pure-JAX reference ------------------------------

def netc_reference(raw, images):
    """f32 XLA reference of the PyTorch forward (training-mode BatchNorm)."""
    x = images.astype(jnp.float32)
    B = x.shape[0]
    dn = ("NCHW", "OIHW", "NCHW")
    y = jax.lax.conv_general_dilated(x, raw["conv1_w"], (1, 1),
                                     ((1, 1), (1, 1)), dimension_numbers=dn)
    y = y + raw["conv1_b"].reshape(1, 2, 1, 1)
    mean = jnp.mean(y, axis=(0, 2, 3), keepdims=True)
    var = jnp.mean((y - mean) ** 2, axis=(0, 2, 3), keepdims=True)
    y = (y - mean) * jax.lax.rsqrt(var + BN_EPS)
    y = y * raw["bn1_g"].reshape(1, 2, 1, 1) + raw["bn1_b"].reshape(1, 2, 1, 1)
    y = jnp.maximum(y, 0.0)
    y = y.reshape(B, 2, 14, 2, 14, 2).max(axis=(3, 5))
    y = jax.lax.conv_general_dilated(y, raw["conv2_w"], (1, 1),
                                     ((1, 1), (1, 1)), dimension_numbers=dn)
    y = y + raw["conv2_b"].reshape(1, 5, 1, 1)
    y = jnp.maximum(y, 0.0)
    y = y.reshape(B, 5 * 14 * 14)
    y = y @ raw["fc1_w"].T + raw["fc1_b"]
    y = y @ raw["fc2_w"].T + raw["fc2_b"]
    return jax.nn.softmax(y, axis=1)


if __name__ == "__main__":
    key = jax.random.PRNGKey(0)
    k_param, k_img, k_lbl = jax.random.split(key, 3)

    raw = init_params(k_param)
    prep = prepare_params(raw)                                  # hoisted, done once
    images = jax.random.normal(k_img, (2, 1, 28, 28), jnp.float32)  # MNIST-sized, B=2
    labels = jax.random.randint(k_lbl, (2,), 0, 10)             # unused by forward

    out = netc_forward(prep, images, labels)
    out = jax.block_until_ready(out)

    assert out.shape == (2, 10)
    assert bool(jnp.all(jnp.isfinite(out)))
    assert bool(jnp.allclose(jnp.sum(out, axis=1), 1.0, atol=1e-5))
    ref = netc_reference(raw, images)
    assert bool(jnp.allclose(out, ref, atol=2e-2)), float(jnp.max(jnp.abs(out - ref)))
    print("KERNEL_OK")
</pallas_src>

<mosaic_0001>
module attributes {stable_mosaic.version = 11 : i64} {
  func.func @_netc_kernel(%arg0: i32, %arg1: i32, %arg2: memref<1x9x800xbf16, #tpu.memory_space<vmem>>, %arg3: memref<1x800xf32, #tpu.memory_space<vmem>>, %arg4: memref<9x196xf32, #tpu.memory_space<vmem>>, %arg5: memref<8x9xbf16, #tpu.memory_space<vmem>>, %arg6: memref<8x1xf32, #tpu.memory_space<vmem>>, %arg7: memref<8x1xf32, #tpu.memory_space<vmem>>, %arg8: memref<8x1xf32, #tpu.memory_space<vmem>>, %arg9: memref<9x8x8xbf16, #tpu.memory_space<vmem>>, %arg10: memref<8x1xf32, #tpu.memory_space<vmem>>, %arg11: memref<5x196x100xbf16, #tpu.memory_space<vmem>>, %arg12: memref<1x100xf32, #tpu.memory_space<vmem>>, %arg13: memref<100x10xbf16, #tpu.memory_space<vmem>>, %arg14: memref<1x10xf32, #tpu.memory_space<vmem>>, %arg15: memref<1x1x10xf32, #tpu.memory_space<vmem>>, %arg16: memref<8x1xf32, #tpu.memory_space<vmem>>, %arg17: memref<8x1xf32, #tpu.memory_space<vmem>>, %arg18: memref<8x228xf32, #tpu.memory_space<vmem>>) attributes {dimension_semantics = [#tpu.dimension_semantics<arbitrary>, #tpu.dimension_semantics<arbitrary>], iteration_bounds = array<i64: 2, 2>, scalar_prefetch = 0 : i64, scratch_operands = 3 : i64, tpu.core_type = #tpu.core_type<tc>, window_params = [{transform_indices = @transform_0, window_bounds = array<i64: 1, 9, 800>}, {pipeline_mode = #tpu.pipeline_mode<synchronous>, transform_indices = @transform_1, window_bounds = array<i64: 1, 800>}, {pipeline_mode = #tpu.pipeline_mode<synchronous>, transform_indices = @transform_2, window_bounds = array<i64: 9, 196>}, {pipeline_mode = #tpu.pipeline_mode<synchronous>, transform_indices = @transform_3, window_bounds = array<i64: 8, 9>}, {pipeline_mode = #tpu.pipeline_mode<synchronous>, transform_indices = @transform_4, window_bounds = array<i64: 8, 1>}, {pipeline_mode = #tpu.pipeline_mode<synchronous>, transform_indices = @transform_5, window_bounds = array<i64: 8, 1>}, {pipeline_mode = #tpu.pipeline_mode<synchronous>, transform_indices = @transform_6, window_bounds = array<i64: 8, 1>}, {pipeline_mode = #tpu.pipeline_mode<synchronous>, transform_indices = @transform_7, window_bounds = array<i64: 9, 8, 8>}, {pipeline_mode = #tpu.pipeline_mode<synchronous>, transform_indices = @transform_8, window_bounds = array<i64: 8, 1>}, {pipeline_mode = #tpu.pipeline_mode<synchronous>, transform_indices = @transform_9, window_bounds = array<i64: 5, 196, 100>}, {pipeline_mode = #tpu.pipeline_mode<synchronous>, transform_indices = @transform_10, window_bounds = array<i64: 1, 100>}, {pipeline_mode = #tpu.pipeline_mode<synchronous>, transform_indices = @transform_11, window_bounds = array<i64: 100, 10>}, {pipeline_mode = #tpu.pipeline_mode<synchronous>, transform_indices = @transform_12, window_bounds = array<i64: 1, 10>}, {transform_indices = @transform_13, window_bounds = array<i64: 1, 1, 10>}]} {
    %c0 = arith.constant 0 : index
    %c0_0 = arith.constant 0 : index
    %c0_1 = arith.constant 0 : index
    %0 = vector.load %arg2[%c0, %c0_0, %c0_1] : memref<1x9x800xbf16, #tpu.memory_space<vmem>>, vector<1x9x800xbf16>
    %1 = vector.shape_cast %0 : vector<1x9x800xbf16> to vector<9x800xbf16>
    %c0_2 = arith.constant 0 : index
    %c0_3 = arith.constant 0 : index
    %2 = vector.load %arg5[%c0_2, %c0_3] : memref<8x9xbf16, #tpu.memory_space<vmem>>, vector<8x9xbf16>
    %cst = arith.constant dense<0.000000e+00> : vector<8x800xf32>
    %3 = tpu.matmul %2, %1, %cst {dimension_numbers = #tpu.dot_dimension_numbers<[1], [0], [0], [1], [0, 0, 1, 1], [], []>} : vector<8x9xbf16>, vector<9x800xbf16>, vector<8x800xf32> -> vector<8x800xf32>
    %c0_4 = arith.constant 0 : index
    %c0_5 = arith.constant 0 : index
    %4 = vector.load %arg6[%c0_4, %c0_5] : memref<8x1xf32, #tpu.memory_space<vmem>>, vector<8x1xf32>
    %5 = vector.broadcast %4 : vector<8x1xf32> to vector<8x800xf32>
    %6 = arith.addf %3, %5 : vector<8x800xf32>
    %c0_i32 = arith.constant 0 : i32
    %7 = arith.cmpi eq, %arg0, %c0_i32 : i32
    %c0_i32_6 = arith.constant 0 : i32
    %8 = arith.cmpi eq, %arg1, %c0_i32_6 : i32
    %9 = arith.andi %7, %8 : i1
    %10 = arith.extui %9 : i1 to i32
    %c0_i32_7 = arith.constant 0 : i32
    %11 = arith.cmpi ne, %10, %c0_i32_7 : i32
    scf.if %11 {
      %cst_11 = arith.constant 0.000000e+00 : f32
      %18 = vector.broadcast %cst_11 : f32 to vector<8x1xf32>
      %c0_12 = arith.constant 0 : index
      %c0_13 = arith.constant 0 : index
      %19 = vector.load %arg16[%c0_12, %c0_13] : memref<8x1xf32, #tpu.memory_space<vmem>>, vector<8x1xf32>
      tpu.vector_store %arg16[%c0_12, %c0_13], %18 {strides = array<i32>} : memref<8x1xf32, #tpu.memory_space<vmem>>, vector<8x1xf32>,
      %cst_14 = arith.constant 0.000000e+00 : f32
      %20 = vector.broadcast %cst_14 : f32 to vector<8x1xf32>
      %c0_15 = arith.constant 0 : index
      %c0_16 = arith.constant 0 : index
      %21 = vector.load %arg17[%c0_15, %c0_16] : memref<8x1xf32, #tpu.memory_space<vmem>>, vector<8x1xf32>
      tpu.vector_store %arg17[%c0_15, %c0_16], %20 {strides = array<i32>} : memref<8x1xf32, #tpu.memory_space<vmem>>, vector<8x1xf32>,
    } else {
    }
    %c0_i32_8 = arith.constant 0 : i32
    %12 = arith.cmpi eq, %arg0, %c0_i32_8 : i32
    %13 = arith.extui %12 : i1 to i32
    %c0_i32_9 = arith.constant 0 : i32
    %14 = arith.cmpi ne, %13, %c0_i32_9 : i32
    scf.if %14 {
      %c0_11 = arith.constant 0 : index
      %c0_12 = arith.constant 0 : index
      %18 = vector.load %arg3[%c0_11, %c0_12] : memref<1x800xf32, #tpu.memory_space<vmem>>, vector<1x800xf32>
      %19 = vector.broadcast %18 : vector<1x800xf32> to vector<8x800xf32>
      %20 = arith.mulf %6, %19 : vector<8x800xf32>
      %c0_13 = arith.constant 0 : index
      %c0_14 = arith.constant 0 : index
      %21 = vector.load %arg16[%c0_13, %c0_14] : memref<8x1xf32, #tpu.memory_space<vmem>>, vector<8x1xf32>
      %cst_15 = arith.constant dense<0.000000e+00> : vector<8xf32>
      %22 = vector.multi_reduction <add>, %20, %cst_15 [1] : vector<8x800xf32> to vector<8xf32>
      %23 = vector.shape_cast %22 : vector<8xf32> to vector<8x1xf32>
      %24 = arith.addf %21, %23 : vector<8x1xf32>
      %c0_16 = arith.constant 0 : index
      %c0_17 = arith.constant 0 : index
      %25 = vector.load %arg16[%c0_16, %c0_17] : memref<8x1xf32, #tpu.memory_space<vmem>>, vector<8x1xf32>
      tpu.vector_store %arg16[%c0_16, %c0_17], %24 {strides = array<i32>} : memref<8x1xf32, #tpu.memory_space<vmem>>, vector<8x1xf32>,
      %c0_18 = arith.constant 0 : index
      %c0_19 = arith.constant 0 : index
      %26 = vector.load %arg17[%c0_18, %c0_19] : memref<8x1xf32, #tpu.memory_space<vmem>>, vector<8x1xf32>
      %27 = arith.mulf %20, %20 : vector<8x800xf32>
      %cst_20 = arith.constant dense<0.000000e+00> : vector<8xf32>
      %28 = vector.multi_reduction <add>, %27, %cst_20 [1] : vector<8x800xf32> to vector<8xf32>
      %29 = vector.shape_cast %28 : vector<8xf32> to vector<8x1xf32>
      %30 = arith.addf %26, %29 : vector<8x1xf32>
      %c0_21 = arith.constant 0 : index
      %c0_22 = arith.constant 0 : index
      %31 = vector.load %arg17[%c0_21, %c0_22] : memref<8x1xf32, #tpu.memory_space<vmem>>, vector<8x1xf32>
      tpu.vector_store %arg17[%c0_21, %c0_22], %30 {strides = array<i32>} : memref<8x1xf32, #tpu.memory_space<vmem>>, vector<8x1xf32>,
    } else {
    }
    %c1_i32 = arith.constant 1 : i32
    %15 = arith.cmpi eq, %arg0, %c1_i32 : i32
    %16 = arith.extui %15 : i1 to i32
    %c0_i32_10 = arith.constant 0 : i32
    %17 = arith.cmpi ne, %16, %c0_i32_10 : i32
    scf.if %17 {
      %c0_11 = arith.constant 0 : index
      %c0_12 = arith.constant 0 : index
      %18 = vector.load %arg16[%c0_11, %c0_12] : memref<8x1xf32, #tpu.memory_space<vmem>>, vector<8x1xf32>
      %cst_13 = arith.constant 6.37755089E-4 : f32
      %19 = vector.broadcast %cst_13 : f32 to vector<8x1xf32>
      %20 = arith.mulf %18, %19 : vector<8x1xf32>
      %c0_14 = arith.constant 0 : index
      %c0_15 = arith.constant 0 : index
      %21 = vector.load %arg17[%c0_14, %c0_15] : memref<8x1xf32, #tpu.memory_space<vmem>>, vector<8x1xf32>
      %cst_16 = arith.constant 6.37755089E-4 : f32
      %22 = vector.broadcast %cst_16 : f32 to vector<8x1xf32>
      %23 = arith.mulf %21, %22 : vector<8x1xf32>
      %24 = arith.mulf %20, %20 : vector<8x1xf32>
      %25 = arith.subf %23, %24 : vector<8x1xf32>
      %cst_17 = arith.constant 0.000000e+00 : f32
      %26 = vector.broadcast %cst_17 : f32 to vector<8x1xf32>
      %27 = arith.maximumf %25, %26 : vector<8x1xf32>
      %cst_18 = arith.constant 9.99999974E-6 : f32
      %28 = vector.broadcast %cst_18 : f32 to vector<8x1xf32>
      %29 = arith.addf %27, %28 : vector<8x1xf32>
      %30 = math.rsqrt %29 : vector<8x1xf32>
      %c0_19 = arith.constant 0 : index
      %c0_20 = arith.constant 0 : index
      %31 = vector.load %arg7[%c0_19, %c0_20] : memref<8x1xf32, #tpu.memory_space<vmem>>, vector<8x1xf32>
      %32 = arith.mulf %30, %31 : vector<8x1xf32>
      %33 = vector.broadcast %20 : vector<8x1xf32> to vector<8x800xf32>
      %34 = arith.subf %6, %33 : vector<8x800xf32>
      %35 = vector.broadcast %32 : vector<8x1xf32> to vector<8x800xf32>
      %36 = arith.mulf %34, %35 : vector<8x800xf32>
      %c0_21 = arith.constant 0 : index
      %c0_22 = arith.constant 0 : index
      %37 = vector.load %arg8[%c0_21, %c0_22] : memref<8x1xf32, #tpu.memory_space<vmem>>, vector<8x1xf32>
      %38 = vector.broadcast %37 : vector<8x1xf32> to vector<8x800xf32>
      %39 = arith.addf %36, %38 : vector<8x800xf32>
      %cst_23 = arith.constant 0.000000e+00 : f32
      %40 = vector.broadcast %cst_23 : f32 to vector<8x800xf32>
      %41 = arith.maximumf %39, %40 : vector<8x800xf32>
      %42 = vector.extract_strided_slice %41 {offsets = [0, 0], sizes = [8, 196], strides = [1, 1]} : vector<8x800xf32> to vector<8x196xf32>
      %43 = vector.extract_strided_slice %41 {offsets = [0, 200], sizes = [8, 196], strides = [1, 1]} : vector<8x800xf32> to vector<8x196xf32>
      %44 = arith.maximumf %42, %43 : vector<8x196xf32>
      %45 = vector.extract_strided_slice %41 {offsets = [0, 400], sizes = [8, 196], strides = [1, 1]} : vector<8x800xf32> to vector<8x196xf32>
      %46 = vector.extract_strided_slice %41 {offsets = [0, 600], sizes = [8, 196], strides = [1, 1]} : vector<8x800xf32> to vector<8x196xf32>
      %47 = arith.maximumf %45, %46 : vector<8x196xf32>
      %48 = arith.maximumf %44, %47 : vector<8x196xf32>
      %cst_24 = arith.constant 0.000000e+00 : f32
      %49 = vector.broadcast %cst_24 : f32 to vector<8x228xf32>
      %c0_25 = arith.constant 0 : index
      %c0_26 = arith.constant 0 : index
      %50 = vector.load %arg18[%c0_25, %c0_26] : memref<8x228xf32, #tpu.memory_space<vmem>>, vector<8x228xf32>
      tpu.vector_store %arg18[%c0_25, %c0_26], %49 {strides = array<i32>} : memref<8x228xf32, #tpu.memory_space<vmem>>, vector<8x228xf32>,
      %c0_27 = arith.constant 0 : index
      %c16 = arith.constant 16 : index
      %51 = vector.load %arg18[%c0_27, %c16] : memref<8x228xf32, #tpu.memory_space<vmem>>, vector<8x196xf32>
      tpu.vector_store %arg18[%c0_27, %c16], %48 {strides = array<i32>} : memref<8x228xf32, #tpu.memory_space<vmem>>, vector<8x196xf32>,
      %c0_28 = arith.constant 0 : index
      %c0_29 = arith.constant 0 : index
      %52 = vector.load %arg10[%c0_28, %c0_29] : memref<8x1xf32, #tpu.memory_space<vmem>>, vector<8x1xf32>
      %c0_30 = arith.constant 0 : index
      %c1 = arith.constant 1 : index
      %53 = vector.load %arg18[%c0_30, %c1] : memref<8x228xf32, #tpu.memory_space<vmem>>, vector<8x196xf32>
      %c0_31 = arith.constant 0 : index
      %c0_32 = arith.constant 0 : index
      %54 = vector.load %arg4[%c0_31, %c0_32] : memref<9x196xf32, #tpu.memory_space<vmem>>, vector<1x196xf32>
      %55 = vector.broadcast %54 : vector<1x196xf32> to vector<8x196xf32>
      %56 = arith.mulf %53, %55 : vector<8x196xf32>
      %c0_33 = arith.constant 0 : index
      %c0_34 = arith.constant 0 : index
      %c0_35 = arith.constant 0 : index
      %57 = vector.load %arg9[%c0_33, %c0_34, %c0_35] : memref<9x8x8xbf16, #tpu.memory_space<vmem>>, vector<1x8x8xbf16>
      %58 = vector.shape_cast %57 : vector<1x8x8xbf16> to vector<8x8xbf16>
      %59 = arith.truncf %56 : vector<8x196xf32> to vector<8x196xbf16>
      %cst_36 = arith.constant dense<0.000000e+00> : vector<8x196xf32>
      %60 = tpu.matmul %58, %59, %cst_36 {dimension_numbers = #tpu.dot_dimension_numbers<[1], [0], [0], [1], [0, 0, 1, 1], [], []>} : vector<8x8xbf16>, vector<8x196xbf16>, vector<8x196xf32> -> vector<8x196xf32>
      %61 = vector.broadcast %52 : vector<8x1xf32> to vector<8x196xf32>
      %62 = arith.addf %61, %60 : vector<8x196xf32>
      %c0_37 = arith.constant 0 : index
      %c2 = arith.constant 2 : index
      %63 = vector.load %arg18[%c0_37, %c2] : memref<8x228xf32, #tpu.memory_space<vmem>>, vector<8x196xf32>
      %c1_38 = arith.constant 1 : index
      %c0_39 = arith.constant 0 : index
      %64 = vector.load %arg4[%c1_38, %c0_39] : memref<9x196xf32, #tpu.memory_space<vmem>>, vector<1x196xf32>
      %65 = vector.broadcast %64 : vector<1x196xf32> to vector<8x196xf32>
      %66 = arith.mulf %63, %65 : vector<8x196xf32>
      %c1_40 = arith.constant 1 : index
      %c0_41 = arith.constant 0 : index
      %c0_42 = arith.constant 0 : index
      %67 = vector.load %arg9[%c1_40, %c0_41, %c0_42] : memref<9x8x8xbf16, #tpu.memory_space<vmem>>, vector<1x8x8xbf16>
      %68 = vector.shape_cast %67 : vector<1x8x8xbf16> to vector<8x8xbf16>
      %69 = arith.truncf %66 : vector<8x196xf32> to vector<8x196xbf16>
      %cst_43 = arith.constant dense<0.000000e+00> : vector<8x196xf32>
      %70 = tpu.matmul %68, %69, %cst_43 {dimension_numbers = #tpu.dot_dimension_numbers<[1], [0], [0], [1], [0, 0, 1, 1], [], []>} : vector<8x8xbf16>, vector<8x196xbf16>, vector<8x196xf32> -> vector<8x196xf32>
      %71 = arith.addf %62, %70 : vector<8x196xf32>
      %c0_44 = arith.constant 0 : index
      %c3 = arith.constant 3 : index
      %72 = vector.load %arg18[%c0_44, %c3] : memref<8x228xf32, #tpu.memory_space<vmem>>, vector<8x196xf32>
      %c2_45 = arith.constant 2 : index
      %c0_46 = arith.constant 0 : index
      %73 = vector.load %arg4[%c2_45, %c0_46] : memref<9x196xf32, #tpu.memory_space<vmem>>, vector<1x196xf32>
      %74 = vector.broadcast %73 : vector<1x196xf32> to vector<8x196xf32>
      %75 = arith.mulf %72, %74 : vector<8x196xf32>
      %c2_47 = arith.constant 2 : index
      %c0_48 = arith.constant 0 : index
      %c0_49 = arith.constant 0 : index
      %76 = vector.load %arg9[%c2_47, %c0_48, %c0_49] : memref<9x8x8xbf16, #tpu.memory_space<vmem>>, vector<1x8x8xbf16>
      %77 = vector.shape_cast %76 : vector<1x8x8xbf16> to vector<8x8xbf16>
      %78 = arith.truncf %75 : vector<8x196xf32> to vector<8x196xbf16>
      %cst_50 = arith.constant dense<0.000000e+00> : vector<8x196xf32>
      %79 = tpu.matmul %77, %78, %cst_50 {dimension_numbers = #tpu.dot_dimension_numbers<[1], [0], [0], [1], [0, 0, 1, 1], [], []>} : vector<8x8xbf16>, vector<8x196xbf16>, vector<8x196xf32> -> vector<8x196xf32>
      %80 = arith.addf %71, %79 : vector<8x196xf32>
      %c0_51 = arith.constant 0 : index
      %c15 = arith.constant 15 : index
      %81 = vector.load %arg18[%c0_51, %c15] : memref<8x228xf32, #tpu.memory_space<vmem>>, vector<8x196xf32>
      %c3_52 = arith.constant 3 : index
      %c0_53 = arith.constant 0 : index
      %82 = vector.load %arg4[%c3_52, %c0_53] : memref<9x196xf32, #tpu.memory_space<vmem>>, vector<1x196xf32>
      %83 = vector.broadcast %82 : vector<1x196xf32> to vector<8x196xf32>
      %84 = arith.mulf %81, %83 : vector<8x196xf32>
      %c3_54 = arith.constant 3 : index
      %c0_55 = arith.constant 0 : index
      %c0_56 = arith.constant 0 : index
      %85 = vector.load %arg9[%c3_54, %c0_55, %c0_56] : memref<9x8x8xbf16, #tpu.memory_space<vmem>>, vector<1x8x8xbf16>
      %86 = vector.shape_cast %85 : vector<1x8x8xbf16> to vector<8x8xbf16>
      %87 = arith.truncf %84 : vector<8x196xf32> to vector<8x196xbf16>
      %cst_57 = arith.constant dense<0.000000e+00> : vector<8x196xf32>
      %88 = tpu.matmul %86, %87, %cst_57 {dimension_numbers = #tpu.dot_dimension_numbers<[1], [0], [0], [1], [0, 0, 1, 1], [], []>} : vector<8x8xbf16>, vector<8x196xbf16>, vector<8x196xf32> -> vector<8x196xf32>
      %89 = arith.addf %80, %88 : vector<8x196xf32>
      %c0_58 = arith.constant 0 : index
      %c16_59 = arith.constant 16 : index
      %90 = vector.load %arg18[%c0_58, %c16_59] : memref<8x228xf32, #tpu.memory_space<vmem>>, vector<8x196xf32>
      %c4 = arith.constant 4 : index
      %c0_60 = arith.constant 0 : index
      %91 = vector.load %arg4[%c4, %c0_60] : memref<9x196xf32, #tpu.memory_space<vmem>>, vector<1x196xf32>
      %92 = vector.broadcast %91 : vector<1x196xf32> to vector<8x196xf32>
      %93 = arith.mulf %90, %92 : vector<8x196xf32>
      %c4_61 = arith.constant 4 : index
      %c0_62 = arith.constant 0 : index
      %c0_63 = arith.constant 0 : index
      %94 = vector.load %arg9[%c4_61, %c0_62, %c0_63] : memref<9x8x8xbf16, #tpu.memory_space<vmem>>, vector<1x8x8xbf16>
      %95 = vector.shape_cast %94 : vector<1x8x8xbf16> to vector<8x8xbf16>
      %96 = arith.truncf %93 : vector<8x196xf32> to vector<8x196xbf16>
      %cst_64 = arith.constant dense<0.000000e+00> : vector<8x196xf32>
      %97 = tpu.matmul %95, %96, %cst_64 {dimension_numbers = #tpu.dot_dimension_numbers<[1], [0], [0], [1], [0, 0, 1, 1], [], []>} : vector<8x8xbf16>, vector<8x196xbf16>, vector<8x196xf32> -> vector<8x196xf32>
      %98 = arith.addf %89, %97 : vector<8x196xf32>
      %c0_65 = arith.constant 0 : index
      %c17 = arith.constant 17 : index
      %99 = vector.load %arg18[%c0_65, %c17] : memref<8x228xf32, #tpu.memory_space<vmem>>, vector<8x196xf32>
      %c5 = arith.constant 5 : index
      %c0_66 = arith.constant 0 : index
      %100 = vector.load %arg4[%c5, %c0_66] : memref<9x196xf32, #tpu.memory_space<vmem>>, vector<1x196xf32>
      %101 = vector.broadcast %100 : vector<1x196xf32> to vector<8x196xf32>
      %102 = arith.mulf %99, %101 : vector<8x196xf32>
      %c5_67 = arith.constant 5 : index
      %c0_68 = arith.constant 0 : index
      %c0_69 = arith.constant 0 : index
      %103 = vector.load %arg9[%c5_67, %c0_68, %c0_69] : memref<9x8x8xbf16, #tpu.memory_space<vmem>>, vector<1x8x8xbf16>
      %104 = vector.shape_cast %103 : vector<1x8x8xbf16> to vector<8x8xbf16>
      %105 = arith.truncf %102 : vector<8x196xf32> to vector<8x196xbf16>
      %cst_70 = arith.constant dense<0.000000e+00> : vector<8x196xf32>
      %106 = tpu.matmul %104, %105, %cst_70 {dimension_numbers = #tpu.dot_dimension_numbers<[1], [0], [0], [1], [0, 0, 1, 1], [], []>} : vector<8x8xbf16>, vector<8x196xbf16>, vector<8x196xf32> -> vector<8x196xf32>
      %107 = arith.addf %98, %106 : vector<8x196xf32>
      %c0_71 = arith.constant 0 : index
      %c29 = arith.constant 29 : index
      %108 = vector.load %arg18[%c0_71, %c29] : memref<8x228xf32, #tpu.memory_space<vmem>>, vector<8x196xf32>
      %c6 = arith.constant 6 : index
      %c0_72 = arith.constant 0 : index
      %109 = vector.load %arg4[%c6, %c0_72] : memref<9x196xf32, #tpu.memory_space<vmem>>, vector<1x196xf32>
      %110 = vector.broadcast %109 : vector<1x196xf32> to vector<8x196xf32>
      %111 = arith.mulf %108, %110 : vector<8x196xf32>
      %c6_73 = arith.constant 6 : index
      %c0_74 = arith.constant 0 : index
      %c0_75 = arith.constant 0 : index
      %112 = vector.load %arg9[%c6_73, %c0_74, %c0_75] : memref<9x8x8xbf16, #tpu.memory_space<vmem>>, vector<1x8x8xbf16>
      %113 = vector.shape_cast %112 : vector<1x8x8xbf16> to vector<8x8xbf16>
      %114 = arith.truncf %111 : vector<8x196xf32> to vector<8x196xbf16>
      %cst_76 = arith.constant dense<0.000000e+00> : vector<8x196xf32>
      %115 = tpu.matmul %113, %114, %cst_76 {dimension_numbers = #tpu.dot_dimension_numbers<[1], [0], [0], [1], [0, 0, 1, 1], [], []>} : vector<8x8xbf16>, vector<8x196xbf16>, vector<8x196xf32> -> vector<8x196xf32>
      %116 = arith.addf %107, %115 : vector<8x196xf32>
      %c0_77 = arith.constant 0 : index
      %c30 = arith.constant 30 : index
      %117 = vector.load %arg18[%c0_77, %c30] : memref<8x228xf32, #tpu.memory_space<vmem>>, vector<8x196xf32>
      %c7 = arith.constant 7 : index
      %c0_78 = arith.constant 0 : index
      %118 = vector.load %arg4[%c7, %c0_78] : memref<9x196xf32, #tpu.memory_space<vmem>>, vector<1x196xf32>
      %119 = vector.broadcast %118 : vector<1x196xf32> to vector<8x196xf32>
      %120 = arith.mulf %117, %119 : vector<8x196xf32>
      %c7_79 = arith.constant 7 : index
      %c0_80 = arith.constant 0 : index
      %c0_81 = arith.constant 0 : index
      %121 = vector.load %arg9[%c7_79, %c0_80, %c0_81] : memref<9x8x8xbf16, #tpu.memory_space<vmem>>, vector<1x8x8xbf16>
      %122 = vector.shape_cast %121 : vector<1x8x8xbf16> to vector<8x8xbf16>
      %123 = arith.truncf %120 : vector<8x196xf32> to vector<8x196xbf16>
      %cst_82 = arith.constant dense<0.000000e+00> : vector<8x196xf32>
      %124 = tpu.matmul %122, %123, %cst_82 {dimension_numbers = #tpu.dot_dimension_numbers<[1], [0], [0], [1], [0, 0, 1, 1], [], []>} : vector<8x8xbf16>, vector<8x196xbf16>, vector<8x196xf32> -> vector<8x196xf32>
      %125 = arith.addf %116, %124 : vector<8x196xf32>
      %c0_83 = arith.constant 0 : index
      %c31 = arith.constant 31 : index
      %126 = vector.load %arg18[%c0_83, %c31] : memref<8x228xf32, #tpu.memory_space<vmem>>, vector<8x196xf32>
      %c8 = arith.constant 8 : index
      %c0_84 = arith.constant 0 : index
      %127 = vector.load %arg4[%c8, %c0_84] : memref<9x196xf32, #tpu.memory_space<vmem>>, vector<1x196xf32>
      %128 = vector.broadcast %127 : vector<1x196xf32> to vector<8x196xf32>
      %129 = arith.mulf %126, %128 : vector<8x196xf32>
      %c8_85 = arith.constant 8 : index
      %c0_86 = arith.constant 0 : index
      %c0_87 = arith.constant 0 : index
      %130 = vector.load %arg9[%c8_85, %c0_86, %c0_87] : memref<9x8x8xbf16, #tpu.memory_space<vmem>>, vector<1x8x8xbf16>
      %131 = vector.shape_cast %130 : vector<1x8x8xbf16> to vector<8x8xbf16>
      %132 = arith.truncf %129 : vector<8x196xf32> to vector<8x196xbf16>
      %cst_88 = arith.constant dense<0.000000e+00> : vector<8x196xf32>
      %133 = tpu.matmul %131, %132, %cst_88 {dimension_numbers = #tpu.dot_dimension_numbers<[1], [0], [0], [1], [0, 0, 1, 1], [], []>} : vector<8x8xbf16>, vector<8x196xbf16>, vector<8x196xf32> -> vector<8x196xf32>
      %134 = arith.addf %125, %133 : vector<8x196xf32>
      %cst_89 = arith.constant 0.000000e+00 : f32
      %135 = vector.broadcast %cst_89 : f32 to vector<8x196xf32>
      %136 = arith.maximumf %134, %135 : vector<8x196xf32>
      %c0_90 = arith.constant 0 : index
      %c0_91 = arith.constant 0 : index
      %137 = vector.load %arg12[%c0_90, %c0_91] : memref<1x100xf32, #tpu.memory_space<vmem>>, vector<1x100xf32>
      %138 = vector.extract_strided_slice %136 {offsets = [0, 0], sizes = [1, 196], strides = [1, 1]} : vector<8x196xf32> to vector<1x196xf32>
      %139 = arith.truncf %138 : vector<1x196xf32> to vector<1x196xbf16>
      %c0_92 = arith.constant 0 : index
      %c0_93 = arith.constant 0 : index
      %c0_94 = arith.constant 0 : index
      %140 = vector.load %arg11[%c0_92, %c0_93, %c0_94] : memref<5x196x100xbf16, #tpu.memory_space<vmem>>, vector<1x196x100xbf16>
      %141 = vector.shape_cast %140 : vector<1x196x100xbf16> to vector<196x100xbf16>
      %cst_95 = arith.constant dense<0.000000e+00> : vector<1x100xf32>
      %142 = tpu.matmul %139, %141, %cst_95 {dimension_numbers = #tpu.dot_dimension_numbers<[1], [0], [0], [1], [0, 0, 1, 1], [], []>} : vector<1x196xbf16>, vector<196x100xbf16>, vector<1x100xf32> -> vector<1x100xf32>
      %143 = arith.addf %137, %142 : vector<1x100xf32>
      %144 = vector.extract_strided_slice %136 {offsets = [1, 0], sizes = [1, 196], strides = [1, 1]} : vector<8x196xf32> to vector<1x196xf32>
      %145 = arith.truncf %144 : vector<1x196xf32> to vector<1x196xbf16>
      %c1_96 = arith.constant 1 : index
      %c0_97 = arith.constant 0 : index
      %c0_98 = arith.constant 0 : index
      %146 = vector.load %arg11[%c1_96, %c0_97, %c0_98] : memref<5x196x100xbf16, #tpu.memory_space<vmem>>, vector<1x196x100xbf16>
      %147 = vector.shape_cast %146 : vector<1x196x100xbf16> to vector<196x100xbf16>
      %cst_99 = arith.constant dense<0.000000e+00> : vector<1x100xf32>
      %148 = tpu.matmul %145, %147, %cst_99 {dimension_numbers = #tpu.dot_dimension_numbers<[1], [0], [0], [1], [0, 0, 1, 1], [], []>} : vector<1x196xbf16>, vector<196x100xbf16>, vector<1x100xf32> -> vector<1x100xf32>
      %149 = arith.addf %143, %148 : vector<1x100xf32>
      %150 = vector.extract_strided_slice %136 {offsets = [2, 0], sizes = [1, 196], strides = [1, 1]} : vector<8x196xf32> to vector<1x196xf32>
      %151 = arith.truncf %150 : vector<1x196xf32> to vector<1x196xbf16>
      %c2_100 = arith.constant 2 : index
      %c0_101 = arith.constant 0 : index
      %c0_102 = arith.constant 0 : index
      %152 = vector.load %arg11[%c2_100, %c0_101, %c0_102] : memref<5x196x100xbf16, #tpu.memory_space<vmem>>, vector<1x196x100xbf16>
      %153 = vector.shape_cast %152 : vector<1x196x100xbf16> to vector<196x100xbf16>
      %cst_103 = arith.constant dense<0.000000e+00> : vector<1x100xf32>
      %154 = tpu.matmul %151, %153, %cst_103 {dimension_numbers = #tpu.dot_dimension_numbers<[1], [0], [0], [1], [0, 0, 1, 1], [], []>} : vector<1x196xbf16>, vector<196x100xbf16>, vector<1x100xf32> -> vector<1x100xf32>
      %155 = arith.addf %149, %154 : vector<1x100xf32>
      %156 = vector.extract_strided_slice %136 {offsets = [3, 0], sizes = [1, 196], strides = [1, 1]} : vector<8x196xf32> to vector<1x196xf32>
      %157 = arith.truncf %156 : vector<1x196xf32> to vector<1x196xbf16>
      %c3_104 = arith.constant 3 : index
      %c0_105 = arith.constant 0 : index
      %c0_106 = arith.constant 0 : index
      %158 = vector.load %arg11[%c3_104, %c0_105, %c0_106] : memref<5x196x100xbf16, #tpu.memory_space<vmem>>, vector<1x196x100xbf16>
      %159 = vector.shape_cast %158 : vector<1x196x100xbf16> to vector<196x100xbf16>
      %cst_107 = arith.constant dense<0.000000e+00> : vector<1x100xf32>
      %160 = tpu.matmul %157, %159, %cst_107 {dimension_numbers = #tpu.dot_dimension_numbers<[1], [0], [0], [1], [0, 0, 1, 1], [], []>} : vector<1x196xbf16>, vector<196x100xbf16>, vector<1x100xf32> -> vector<1x100xf32>
      %161 = arith.addf %155, %160 : vector<1x100xf32>
      %162 = vector.extract_strided_slice %136 {offsets = [4, 0], sizes = [1, 196], strides = [1, 1]} : vector<8x196xf32> to vector<1x196xf32>
      %163 = arith.truncf %162 : vector<1x196xf32> to vector<1x196xbf16>
      %c4_108 = arith.constant 4 : index
      %c0_109 = arith.constant 0 : index
      %c0_110 = arith.constant 0 : index
      %164 = vector.load %arg11[%c4_108, %c0_109, %c0_110] : memref<5x196x100xbf16, #tpu.memory_space<vmem>>, vector<1x196x100xbf16>
      %165 = vector.shape_cast %164 : vector<1x196x100xbf16> to vector<196x100xbf16>
      %cst_111 = arith.constant dense<0.000000e+00> : vector<1x100xf32>
      %166 = tpu.matmul %163, %165, %cst_111 {dimension_numbers = #tpu.dot_dimension_numbers<[1], [0], [0], [1], [0, 0, 1, 1], [], []>} : vector<1x196xbf16>, vector<196x100xbf16>, vector<1x100xf32> -> vector<1x100xf32>
      %167 = arith.addf %161, %166 : vector<1x100xf32>
      %168 = arith.truncf %167 : vector<1x100xf32> to vector<1x100xbf16>
      %c0_112 = arith.constant 0 : index
      %c0_113 = arith.constant 0 : index
      %169 = vector.load %arg13[%c0_112, %c0_113] : memref<100x10xbf16, #tpu.memory_space<vmem>>, vector<100x10xbf16>
      %cst_114 = arith.constant dense<0.000000e+00> : vector<1x10xf32>
      %170 = tpu.matmul %168, %169, %cst_114 {dimension_numbers = #tpu.dot_dimension_numbers<[1], [0], [0], [1], [0, 0, 1, 1], [], []>} : vector<1x100xbf16>, vector<100x10xbf16>, vector<1x10xf32> -> vector<1x10xf32>
      %c0_115 = arith.constant 0 : index
      %c0_116 = arith.constant 0 : index
      %171 = vector.load %arg14[%c0_115, %c0_116] : memref<1x10xf32, #tpu.memory_space<vmem>>, vector<1x10xf32>
      %172 = arith.addf %170, %171 : vector<1x10xf32>
      %cst_117 = arith.constant dense<0xFF800000> : vector<1xf32>
      %173 = vector.multi_reduction <maximumf>, %172, %cst_117 [1] : vector<1x10xf32> to vector<1xf32>
      %174 = vector.shape_cast %173 : vector<1xf32> to vector<1x1xf32>
      %175 = vector.broadcast %174 : vector<1x1xf32> to vector<1x10xf32>
      %176 = arith.subf %172, %175 : vector<1x10xf32>
      %177 = math.exp %176 : vector<1x10xf32>
      %cst_118 = arith.constant dense<0.000000e+00> : vector<1xf32>
      %178 = vector.multi_reduction <add>, %177, %cst_118 [1] : vector<1x10xf32> to vector<1xf32>
      %179 = vector.shape_cast %178 : vector<1xf32> to vector<1x1xf32>
      %180 = vector.broadcast %179 : vector<1x1xf32> to vector<1x10xf32>
      %181 = arith.divf %177, %180 : vector<1x10xf32>
      %182 = vector.shape_cast %181 : vector<1x10xf32> to vector<1x1x10xf32>
      %c0_119 = arith.constant 0 : index
      %c0_120 = arith.constant 0 : index
      %c0_121 = arith.constant 0 : index
      %183 = vector.load %arg15[%c0_119, %c0_120, %c0_121] : memref<1x1x10xf32, #tpu.memory_space<vmem>>, vector<1x1x10xf32>
      tpu.vector_store %arg15[%c0_119, %c0_120, %c0_121], %182 {strides = array<i32>} : memref<1x1x10xf32, #tpu.memory_space<vmem>>, vector<1x1x10xf32>,
    } else {
    }
    return
  }
  func.func @transform_0(%arg0: i32, %arg1: i32) -> (i32, i32, i32) {
    %c0_i32 = arith.constant 0 : i32
    %c0_i32_0 = arith.constant 0 : i32
    %c0_i32_1 = arith.constant 0 : i32
    return %arg1, %c0_i32, %c0_i32_0 : i32, i32, i32
  }
  func.func @transform_1(%arg0: i32, %arg1: i32) -> (i32, i32) {
    %c0_i32 = arith.constant 0 : i32
    %c0_i32_0 = arith.constant 0 : i32
    %c0_i32_1 = arith.constant 0 : i32
    return %c0_i32, %c0_i32_0 : i32, i32
  }
  func.func @transform_2(%arg0: i32, %arg1: i32) -> (i32, i32) {
    %c0_i32 = arith.constant 0 : i32
    %c0_i32_0 = arith.constant 0 : i32
    %c0_i32_1 = arith.constant 0 : i32
    return %c0_i32, %c0_i32_0 : i32, i32
  }
  func.func @transform_3(%arg0: i32, %arg1: i32) -> (i32, i32) {
    %c0_i32 = arith.constant 0 : i32
    %c0_i32_0 = arith.constant 0 : i32
    %c0_i32_1 = arith.constant 0 : i32
    return %c0_i32, %c0_i32_0 : i32, i32
  }
  func.func @transform_4(%arg0: i32, %arg1: i32) -> (i32, i32) {
    %c0_i32 = arith.constant 0 : i32
    %c0_i32_0 = arith.constant 0 : i32
    %c0_i32_1 = arith.constant 0 : i32
    return %c0_i32, %c0_i32_0 : i32, i32
  }
  func.func @transform_5(%arg0: i32, %arg1: i32) -> (i32, i32) {
    %c0_i32 = arith.constant 0 : i32
    %c0_i32_0 = arith.constant 0 : i32
    %c0_i32_1 = arith.constant 0 : i32
    return %c0_i32, %c0_i32_0 : i32, i32
  }
  func.func @transform_6(%arg0: i32, %arg1: i32) -> (i32, i32) {
    %c0_i32 = arith.constant 0 : i32
    %c0_i32_0 = arith.constant 0 : i32
    %c0_i32_1 = arith.constant 0 : i32
    return %c0_i32, %c0_i32_0 : i32, i32
  }
  func.func @transform_7(%arg0: i32, %arg1: i32) -> (i32, i32, i32) {
    %c0_i32 = arith.constant 0 : i32
    %c0_i32_0 = arith.constant 0 : i32
    %c0_i32_1 = arith.constant 0 : i32
    %c0_i32_2 = arith.constant 0 : i32
    return %c0_i32, %c0_i32_0, %c0_i32_1 : i32, i32, i32
  }
  func.func @transform_8(%arg0: i32, %arg1: i32) -> (i32, i32) {
    %c0_i32 = arith.constant 0 : i32
    %c0_i32_0 = arith.constant 0 : i32
    %c0_i32_1 = arith.constant 0 : i32
    return %c0_i32, %c0_i32_0 : i32, i32
  }
  func.func @transform_9(%arg0: i32, %arg1: i32) -> (i32, i32, i32) {
    %c0_i32 = arith.constant 0 : i32
    %c0_i32_0 = arith.constant 0 : i32
    %c0_i32_1 = arith.constant 0 : i32
    %c0_i32_2 = arith.constant 0 : i32
    return %c0_i32, %c0_i32_0, %c0_i32_1 : i32, i32, i32
  }
  func.func @transform_10(%arg0: i32, %arg1: i32) -> (i32, i32) {
    %c0_i32 = arith.constant 0 : i32
    %c0_i32_0 = arith.constant 0 : i32
    %c0_i32_1 = arith.constant 0 : i32
    return %c0_i32, %c0_i32_0 : i32, i32
  }
  func.func @transform_11(%arg0: i32, %arg1: i32) -> (i32, i32) {
    %c0_i32 = arith.constant 0 : i32
    %c0_i32_0 = arith.constant 0 : i32
    %c0_i32_1 = arith.constant 0 : i32
    return %c0_i32, %c0_i32_0 : i32, i32
  }
  func.func @transform_12(%arg0: i32, %arg1: i32) -> (i32, i32) {
    %c0_i32 = arith.constant 0 : i32
    %c0_i32_0 = arith.constant 0 : i32
    %c0_i32_1 = arith.constant 0 : i32
    return %c0_i32, %c0_i32_0 : i32, i32
  }
  func.func @transform_13(%arg0: i32, %arg1: i32) -> (i32, i32, i32) {
    %c0_i32 = arith.constant 0 : i32
    %c0_i32_0 = arith.constant 0 : i32
    %c0_i32_1 = arith.constant 0 : i32
    return %arg1, %c0_i32, %c0_i32_0 : i32, i32, i32
  }
}

</mosaic_0001>

<bundles_post_ra>
// kernel: netc_forward.1
= control target key start
LH: loop header
LB: loop body
LE: loop exit
PB: predicated region body
PF: predicated region fallthrough
CT: control target
= control target key end

     0   :  { %s3646_s0 = inlined_call_operand.vmem [shape: bf16[2,9,800], index: 0, kind: input, shape index: {}]   ;;  %s3647_s1 = inlined_call_operand.vmem [shape: f32[1,800], index: 1, kind: input, shape index: {}]   ;;  %s3648_s2 = inlined_call_operand.vmem [shape: f32[9,196], index: 2, kind: input, shape index: {}]   ;;  %s3649_s3 = inlined_call_operand.vmem [shape: bf16[8,9], index: 3, kind: input, shape index: {}]   ;;  %s3650_s4 = inlined_call_operand.vmem [shape: f32[8,1], index: 4, kind: input, shape index: {}]   ;;  %s3651_s5 = inlined_call_operand.vmem [shape: f32[8,1], index: 5, kind: input, shape index: {}]   ;;  %s3652_s6 = inlined_call_operand.vmem [shape: f32[8,1], index: 6, kind: input, shape index: {}]   ;;  %s3653_s7 = inlined_call_operand.vmem [shape: bf16[9,8,8], index: 7, kind: input, shape index: {}]   ;;  %s3654_s8 = inlined_call_operand.vmem [shape: f32[8,1], index: 8, kind: input, shape index: {}]   ;;  %s3655_s9 = inlined_call_operand.vmem [shape: bf16[5,196,100], index: 9, kind: input, shape index: {}]   ;;  %s3656_s10 = inlined_call_operand.vmem [shape: f32[1,100], index: 10, kind: input, shape index: {}]   ;;  %s3657_s11 = inlined_call_operand.vmem [shape: bf16[100,10], index: 11, kind: input, shape index: {}]   ;;  %s3658_s12 = inlined_call_operand.vmem [shape: f32[1,10], index: 12, kind: input, shape index: {}]   ;;  %s3659_s13 = inlined_call_operand.hbm [shape: f32[2,1,10], index: 13, kind: output, shape index: {}]  }
   0x1   :  { %3667 = sst [smem:[#allocation12_spill]] %s3646_s0 }
   0x2   :  { %3668 = sst [smem:[#allocation13_spill]] %s3647_s1 }
   0x3   :  { %3669 = sst [smem:[#allocation14_spill]] %s3648_s2 }
   0x4   :  { %3670 = sst [smem:[#allocation15_spill]] %s3649_s3 }
   0x5   :  { %18 = vsyncpa [#allocation6], 0 }
   0x6   :  { %20 = vsyncpa [#allocation6 + $0x1], 0  ;;  %s3081_s25 = smov 0   ;;  %s3083_s26 = smov 0  }
   0x7   :  { %s3085_s27 = smov 0   ;;  %s3087_s28 = smov 0  }
   0x8   :  { %s3089_s29 = smov 0   ;;  %s3091_s30 = smov 0  }
   0x9   :  { %s3093_s14 = smov 0   ;;  %s3095_s15 = smov 0  }
   0xa LB: > { %3671 = sst [smem:[#allocation8_spill]] %s2977_s30  ;;  %s2264_s16 = sadd.s32 4294967295, %s2985_s15   ;;  %s2985_s15 = sphi %s3095_s15, %s26_s15   ;;  %s2981_s14 = sphi %s3093_s14, %s3688_s14   ;;  %s2977_s30 = sphi %s3091_s30, %s3687_s30   ;;  %s2973_s29 = sphi %s3089_s29, %s3686_s29   ;;  %s2969_s28 = sphi %s3087_s28, %s3685_s28   ;;  %s2965_s27 = sphi %s3085_s27, %s3691_s27   ;;  %s2961_s26 = sphi %s3083_s26, %s3690_s26   ;;  %s2957_s25 = sphi %s3081_s25, %s3689_s25  }
   0xb   : > { %3672 = sst [smem:[#allocation9_spill]] %s2981_s14  ;;  %s2265_s17 = sadd.s32 4294967294, %s2985_s15  }
   0xc   : > { %s35_s18 = sadd.s32 1, %s2977_s30  ;;  %s38_s19 = sadd.s32 1, %s2981_s14 }
   0xd   : > { %p36_p0 = scmp.ge.s32.totalorder %s35_s18, 2  ;;  %s323_s20 = sadd.s32 1, %s2965_s27 }
   0xe   : > { %p333_p1 = scmp.ne.s32.totalorder %s2965_s27, %s2961_s26  ;;  %p334_p2 = scmp.eq.s32.totalorder %s2264_s16, 3 }
   0xf   : > { %s3693_s18 = smov (%p36_p0, %s35_s18), 0  ;;  %s3695_s19 = smov (!%p36_p0, %s38_s19), %s2981_s14 }
  0x10   : > { %3673 = sst [smem:[#allocation10_spill]] %s3693_s18  ;;  %s320_s21 = ssub.s32 %s2977_s30, %s3693_s18 }
  0x11   : > { %p3133_p3 = por %p334_p2, %p333_p1  ;;  %p40_p4 = scmp.ge.s32.totalorder %s3695_s19, 2 }
  0x12   : > { %p321_p5 = scmp.eq.s32.totalorder %s320_s21, 0  ;;  %p339_p6 = scmp.ne.s32.totalorder %s2961_s26, %s2957_s25 }
  0x13   : > { %p340_p7 = scmp.eq.s32.totalorder %s2265_s17, 3  ;;  %s3697_s19 = smov (%p40_p4, %s3695_s19), 0 }
  0x14   : > { %3675 = sst [smem:[#allocation11_spill]] %s3697_s19  ;;  %p2268_p9 = scmp.ge.s32.totalorder %s2985_s15, 1 }
  0x15   : > { %s3142_s23 = scalar_select %p321_p5, %s2965_s27, %s323_s20  }
  0x16   : > { %p3144_p8 = por %p340_p7, %p339_p6  ;;  %p402_p10 = scmp.lt.s32.totalorder %s2985_s15, 5 }
  0x18   : > { %p403_p11 = pnand %p2268_p9, %p402_p10 }
  0x19   : > { %s3663_s16 = sand.u32 (!%p403_p11), 1, %s2961_s26   ;;  %p445_p12 = scmp.lt.s32.totalorder (!%p403_p11), %s2969_s28, 1 }
  0x1a   : > { %406 = sbr.rel (%p403_p11) target bundleno = 1843 (0x733), region = 72  ;;  %s3677_s0 = sld [smem:[#allocation12_spill]] (!%p403_p11) }
  0x1b   : > { %s3678_s3 = sld [smem:[#allocation15_spill]] (!%p403_p11)  ;;  %p615_p13 = scmp.eq.s32.totalorder (!%p403_p11), %s2973_s29, 0 }
  0x1c   : > { %p616_p0 = scmp.eq.s32.totalorder (!%p403_p11), %s2969_s28, 0 }
  0x1e   : > { %p3172_p1 = pnand (!%p403_p11), %p616_p0, %p615_p13 }
  0x1f   : > { %vm499_vm0 = vcmask 1043456   ;;  %v460_v0 = vld [vmem:[%s3650_s4] sm:$0xff]  ;;  %s446_s20 = scalar_select %p445_p12, %s2969_s28, 1  ;;  %v2987_v1 = vmov 0   ;;  %vm500_vm1 = vcmask 1044480   ;;  %v2988_v2 = vmov 65535  }
  0x20   : > { %2882 = vset.pattern.permute.xlu0 %v2987_v1  ;;  %v501_v3 = vsel %vm499_vm0, 4294967295, %v2988_v2  ;;  %vm495_vm2 = vcmask 72704  }
  0x21   : > { %463 = vperm.xlu0 %2882, %v460_v0   ;;  %s2786_s19 = smul.u32 56, %s446_s20  ;;  %v502_v4 = vsel %vm500_vm1, %v501_v3, 0  ;;  %v459_v28 = vld [vmem:[%s3678_s3] sm:$0xf] }
  0x23   : > { %s449_s30 = scalar_lea.vmem %s3677_s0, %s2786_s19  ;;  %s3192_s19 = scalar_lea.vmem [#allocation5], %s3663_s16 }
  0x24   : > { %v2272_v5 = vld [vmem:[%s449_s30] sm:$0xf]  ;;  %v2716_v6 = vld [vmem:[%s449_s30 + $0x18] sm:$0x10]  ;;  %v2713_v7 = vld [vmem:[%s449_s30 + $0x4] sm:$0xf] }
  0x25   : > { %v2273_v8 = vor.u32 %v2716_v6, %v2272_v5  ;;  %v2274_v9 = vld [vmem:[%s449_s30 + $0x1c] sm:$0x10]  ;;  %v2280_v10 = vld [vmem:[%s449_s30 + $0x8] sm:$0xf]  ;;  %v2717_v11 = vld [vmem:[%s449_s30 + $0x20] sm:$0x10] }
  0x26   : > { %v2277_v12 = vor.u32 %v2713_v7, %v2274_v9  ;;  %v2281_v13 = vor.u32 %v2717_v11, %v2280_v10  ;;  %v2296_v14 = vld [vmem:[%s449_s30 + $0x18] sm:$0xf]  ;;  %v2719_v15 = vld [vmem:[%s449_s30 + $0x30] sm:$0x10]  ;;  %v2714_v16 = vld [vmem:[%s449_s30 + $0xc] sm:$0xf] }
  0x27   : > { %v504_v17 = vand.u32 %v2273_v8, %v502_v4  ;;  %v2297_v18 = vor.u32 %v2719_v15, %v2296_v14  ;;  %v2282_v19 = vld [vmem:[%s449_s30 + $0x24] sm:$0x10]  ;;  %v2288_v20 = vld [vmem:[%s449_s30 + $0x10] sm:$0xf]  ;;  %v2718_v21 = vld [vmem:[%s449_s30 + $0x28] sm:$0x10] }
  0x28   : > { %v507_v22 = vand.u32 %v2277_v12, %v502_v4  ;;  %v510_v23 = vand.u32 %v2281_v13, %v502_v4  ;;  %v2285_v24 = vor.u32 %v2714_v16, %v2282_v19  ;;  %v2289_v25 = vor.u32 %v2718_v21, %v2288_v20  ;;  %v2715_v26 = vld [vmem:[%s449_s30 + $0x14] sm:$0xf]  ;;  %v2290_v27 = vld [vmem:[%s449_s30 + $0x2c] sm:$0x10] }
  0x29   : > { %531 = vmatpush.bf16.msra.mxu0 %v504_v17  ;;  %v522_v29 = vand.u32 %v2297_v18, %v502_v4  ;;  %v2293_v30 = vor.u32 %v2715_v26, %v2290_v27 }
  0x2a   : > { %544 = vmatpush.bf16.msra.mxu1 %v507_v22  ;;  %557 = vmatpush.bf16.msra.mxu2 %v510_v23  ;;  %v513_v31 = vand.u32 %v2285_v24, %v502_v4  ;;  %v516_v32 = vand.u32 %v2289_v25, %v502_v4 }
  0x2b   : > { %v519_v33 = vand.u32 %v2293_v30, %v502_v4 }
  0x2c   : > { %2298 = vmatmul.msk.bf16.vlgmr.msra.gmra.mxu0 %vm495_vm2, %v459_v28  ;;  %570 = vmatpush.bf16.msra.mxu3 %v513_v31 }
  0x2d   : > { %2299 = vmatmul.msk.bf16.vlgmr.msra.gmra.mxu1 %vm495_vm2, %v459_v28  ;;  %2300 = vmatmul.msk.bf16.vlgmr.msra.gmra.mxu2 %vm495_vm2, %v459_v28 }
  0x2e   : > { %609 = vmatpush.bf16.msrb.mxu2 %v522_v29  ;;  %583 = vmatpush.bf16.msrb.mxu0 %v516_v32 }
  0x2f   : > { %596 = vmatpush.bf16.msrb.mxu1 %v519_v33  ;;  %2301 = vmatmul.msk.bf16.vlgmr.msra.gmra.mxu3 %vm495_vm2, %v459_v28 }
  0x3c   : > { %2302 = vmatmul.msk.bf16.vlgmr.msrb.gmra.mxu0 %vm495_vm2, %v459_v28 }
  0x3d   : > { %2303 = vmatmul.msk.bf16.vlgmr.msrb.gmra.mxu1 %vm495_vm2, %v459_v28  ;;  %2304 = vmatmul.msk.bf16.vlgmr.msrb.gmra.mxu2 %vm495_vm2, %v459_v28 }
  0x93   : > { %v464_v34 = vpop.permute.xlu0 %463 }
  0xa9   : > { %v533_v35 = vpop.f32.mrf.mxu0 }
  0xaa   : > { %v546_v36 = vpop.f32.mrf.mxu1  ;;  %v3176_v37 = vadd.f32 %v533_v35, %v464_v34 }
  0xab   : > { %v3178_v38 = vadd.f32 %v546_v36, %v464_v34 }
  0xb0   : > { %v559_v39 = vpop.f32.mrf.mxu2 }
  0xb1   : > { %v3180_v40 = vadd.f32 %v559_v39, %v464_v34  ;;  %v535_v41 = vpop.f32.mrf.mxu0 }
  0xb2   : > { %v548_v42 = vpop.f32.mrf.mxu1  ;;  %v572_v43 = vpop.f32.mrf.mxu3 }
  0xb3   : > { %v3182_v44 = vadd.f32 %v572_v43, %v464_v34 }
  0xb8   : > { %v561_v45 = vpop.f32.mrf.mxu2 }
  0xb9   : > { %v585_v46 = vpop.f32.mrf.mxu0 }
  0xba   : > { %v3184_v47 = vadd.f32 %v585_v46, %v464_v34  ;;  %v598_v48 = vpop.f32.mrf.mxu1  ;;  %v574_v49 = vpop.f32.mrf.mxu3 }
  0xbb   : > { %v3186_v50 = vadd.f32 %v598_v48, %v464_v34 }
  0xc0   : > { %v611_v51 = vpop.f32.mrf.mxu2 }
  0xc1   : > { %v3188_v52 = vadd.f32 %v611_v51, %v464_v34  ;;  %v587_v53 = vpop.f32.mrf.mxu0 }
  0xc2   : > { %v600_v54 = vpop.f32.mrf.mxu1 }
  0xc4   : > { %620 = sbr.rel (%p3172_p1) target bundleno = 204 (0xcc), region = 76 }
  0xc8   : > { %v613_v55 = vpop.f32.mrf.mxu2 }
  0xc9   : > { %vm621_vm3 = vcmask 7168   ;;  %v2989_v56 = vmov 0.0  }
  0xca   : > { %622 = vst.msk [vmem:[#allocation2] sm:$0xff] %vm621_vm3, %v2989_v56 }
  0xcb   : > { %623 = vst.msk [vmem:[#allocation3] sm:$0xff] %vm621_vm3, %v2989_v56 }
  0xcc PF: > { %p2305_p2 = scmp.ne.s32.totalorder %s2973_s29, 0 }
  0xcd   : > { %s3680_s1 = sld [smem:[#allocation13_spill]] (!%p2305_p2) }
  0xce   : > { %626 = sbr.rel (%p2305_p2) target bundleno = 355 (0x163), region = 80 }
  0xd3   : > { %v627_v57 = vld [vmem:[%s3680_s1] sm:$0x7f]  ;;  %vm656_vm4 = vcmask 261120   ;;  %vm662_vm5 = vcmask 7168   ;;  %v664_v32 = vld [vmem:[#allocation3] sm:$0xff] }
  0xd4   : > { %v629_v58 = vperm.slane %v627_v57, 0  ;;  %v630_v59 = vperm.slane %v627_v57, 1  ;;  %v631_v60 = vperm.slane %v627_v57, 2  ;;  %v632_v61 = vperm.slane %v627_v57, 3  ;;  %v650_v29 = vld [vmem:[#allocation2] sm:$0xff] }
  0xd5   : > { %v633_v62 = vperm.slane %v627_v57, 4  ;;  %v634_v2 = vperm.slane %v627_v57, 5  ;;  %v635_v3 = vperm.slane %v627_v57, 6 }
  0xd6   : > { %v643_v63 = vmul.f32 %v629_v58, %v3176_v37  ;;  %v644_v0 = vmul.f32 %v630_v59, %v3178_v38  ;;  %v645_v1 = vmul.f32 %v631_v60, %v3180_v40  ;;  %v646_v4 = vmul.f32 %v632_v61, %v3182_v44 }
  0xd7   : > { %v647_v9 = vmul.f32 %v633_v62, %v3184_v47  ;;  %v649_v13 = vmul.f32 %v635_v3, %v3188_v52  ;;  %v648_v14 = vmul.f32 %v634_v2, %v3186_v50 }
  0xd8   : > { %v651_v5 = vadd.f32 %v644_v0, %v643_v63  ;;  %v665_v6 = vmul.f32 %v643_v63, %v643_v63  ;;  %v666_v7 = vmul.f32 %v644_v0, %v644_v0  ;;  %v667_v8 = vmul.f32 %v645_v1, %v645_v1 }
  0xd9   : > { %v668_v11 = vmul.f32 %v646_v4, %v646_v4  ;;  %v669_v16 = vmul.f32 %v647_v9, %v647_v9  ;;  %v657_v20 = vsel %vm656_vm4, %v649_v13, 0.0  ;;  %v670_v22 = vmul.f32 %v648_v14, %v648_v14 }
  0xda   : > { %v652_v10 = vadd.f32 %v651_v5, %v645_v1  ;;  %v672_v12 = vadd.f32 %v666_v7, %v665_v6  ;;  %v671_v24 = vmul.f32 %v649_v13, %v649_v13 }
  0xdc   : > { %v653_v15 = vadd.f32 %v652_v10, %v646_v4  ;;  %v673_v17 = vadd.f32 %v672_v12, %v667_v8  ;;  %v677_v27 = vsel %vm656_vm4, %v671_v24, 0.0 }
  0xde   : > { %v654_v18 = vadd.f32 %v653_v15, %v647_v9  ;;  %v674_v19 = vadd.f32 %v673_v17, %v668_v11 }
  0xe0   : > { %v655_v21 = vadd.f32 %v654_v18, %v648_v14  ;;  %v675_v23 = vadd.f32 %v674_v19, %v669_v16 }
  0xe2   : > { %v658_v25 = vadd.f32 %v657_v20, %v655_v21  ;;  %v676_v26 = vadd.f32 %v675_v23, %v670_v22 }
  0xe4   : > { %659 = vadd.xlane.f32.xlu0 %v658_v25  ;;  %v678_v28 = vadd.f32 %v677_v27, %v676_v26 }
  0xec   : > { %679 = vadd.xlane.f32.xlu0 %v678_v28 }
 0x157   : > { %v660_v30 = vpop.xlane.xlu0 %659 }
 0x158   : > { %v661_v31 = vadd.f32 %v660_v30, %v650_v29 }
 0x15a   : > { %663 = vst.msk [vmem:[#allocation2] sm:$0xff] %vm662_vm5, %v661_v31 }
 0x15f   : > { %v680_v33 = vpop.xlane.xlu0 %679 }
 0x160   : > { %v681_v34 = vadd.f32 %v680_v33, %v664_v32 }
 0x162   : > { %682 = vst.msk [vmem:[#allocation3] sm:$0xff] %vm662_vm5, %v681_v34 }
 0x163 PF: > { %p2306_p4 = scmp.ne.s32.totalorder %s2973_s29, 1 }
 0x164   : > { %s2991_s30 = smov (!%p2306_p4), 56   ;;  %s3664_s21 = smov (!%p2306_p4), 112  }
 0x165   : > { %686 = sbr.rel (%p2306_p4) target bundleno = 1829 (0x725), region = 84  ;;  %s3681_s2 = sld [smem:[#allocation14_spill]] (!%p2306_p4) }
 0x166   : > { %s2993_s14 = smov (!%p2306_p4), 1   ;;  %s2995_s29 = smov (!%p2306_p4), 15  }
 0x167   : > { %s2996_s18 = smov (!%p2306_p4), 16   ;;  %s2997_s17 = smov (!%p2306_p4), 3  }
 0x168   : > { %s3666_s0 = smov (!%p2306_p4), 17   ;;  %s3002_s20 = smov (!%p2306_p4), 30  }
 0x169   : > { %s3004_s16 = smov (!%p2306_p4), 31  }
 0x16a   : > { %v687_v35 = vld [vmem:[#allocation2] sm:$0xff]  ;;  %v689_v36 = vld [vmem:[#allocation3] sm:$0xff]  ;;  %v2990_v39 = vmov 0   ;;  %vm760_vm9 = vcmask 457728   ;;  %vm788_vm10 = vcmask 916480   ;;  %vm795_vm11 = vcmask 818176  }
 0x16b   : > { %2883 = vset.pattern.permute.xlu0 %v2990_v39  ;;  %v688_v41 = vmul.f32 0.0006377551, %v687_v35  ;;  %v690_v42 = vmul.f32 0.0006377551, %v689_v36  ;;  %2884 = vset.pattern.permute.xlu1 %v2990_v39  ;;  %v731_v43 = vld [vmem:[%s3652_s6] sm:$0xff]  ;;  %vm807_vm12 = vcmask 1047680  }
 0x16c   : > { %734 = vperm.xlu1 %2884, %v731_v43   ;;  %v705_v58 = vld [vmem:[%s3651_s5] sm:$0xff]  ;;  %vm803_vm13 = vcmask 130048   ;;  %vm809_vm14 = vcmask 687104   ;;  %vm822_vm15 = vcmask 7168   ;;  %vm891_vm1 = vcmask 15360  }
 0x16d   : > { %709 = vperm.xlu0 %2883, %v688_v41   ;;  %v691_v45 = vmul.f32 %v688_v41, %v688_v41  ;;  %v2309_v24 = vld [vmem:[%s3681_s2 + $0x1] ss:$8 sm:$0x3]  ;;  %vm1019_vm2 = vcmask 121856   ;;  %vm955_vm3 = vcmask 23552   ;;  %vm837_vm4 = vcmask 1039360  }
 0x16e   : > { %v886_v28 = vperm.slane %v2309_v24, 1  ;;  %vm839_vm5 = vcmask 64512  }
 0x16f   : > { %v692_v46 = vsub.f32 %v690_v42, %v691_v45 }
 0x171   : > { %v693_v48 = vmax.f32 %v692_v46, 0.0 }
 0x173   : > { %v694_v49 = vadd.f32 1e-05, %v693_v48  ;;  %v885_v48 = vperm.slane %v2309_v24, 0 }
 0x175   : > { %2885 = vrsqrt.f32 %v694_v49  ;;  %vm701_vm6 = vweird.f32 %v694_v49 }
 0x17b   : > { %v2886_v51 = vpop.eup %2885 }
 0x17c   : > { %v696_v53 = vmul.f32 %v2886_v51, %v694_v49  ;;  %vm702_vm7 = vweird.f32 %v2886_v51  ;;  %v2313_v49 = vld [vmem:[%s3681_s2 + $0x2] ss:$8 sm:$0x3] }
 0x17d   : > { %vm703_vm8 = vmor %vm701_vm6, %vm702_vm7  ;;  %vm1146_vm6 = vcmask 138240   ;;  %vm1210_vm7 = vcmask 236544  }
 0x17e   : > { %v697_v54 = vmul.f32 %v2886_v51, %v696_v53 }
 0x180   : > { %v698_v55 = vmul.f32 0.5, %v697_v54 }
 0x182   : > { %v699_v56 = vsub.f32 1.5, %v698_v55 }
 0x184   : > { %v700_v57 = vmul.f32 %v2886_v51, %v699_v56  ;;  %v2998_v56 = vmov 0.0  }
 0x185   : > { %794 = vst [vmem:[#allocation4] sm:$0xff] %v2998_v56 }
 0x186   : > { %v704_v59 = vsel %vm703_vm8, %v2886_v51, %v700_v57  ;;  %v950_v51 = vperm.slane %v2313_v49, 1  ;;  %796 = vst.msk [vmem:[#allocation4 + $0x8] sm:$0xff] %vm795_vm11, %v2998_v56  ;;  %vm907_vm8 = vcmask 1031168  }
 0x187   : > { %v706_v60 = vmul.f32 %v705_v58, %v704_v59  ;;  %v949_v58 = vperm.slane %v2313_v49, 0 }
 0x189   : > { %721 = vperm.xlu0 %2883, %v706_v60   ;;  %v2321_v60 = vld [vmem:[%s3681_s2 + $0x4] ss:$8 sm:$0x3] }
 0x1de   : > { %v735_v2 = vpop.permute.xlu1 %734 }
 0x1df   : > { %v710_v61 = vpop.permute.xlu0 %709 }
 0x1e0   : > { %v717_v62 = vsub.f32 %v3186_v50, %v710_v61  ;;  %v716_v63 = vsub.f32 %v3184_v47, %v710_v61  ;;  %v713_v0 = vsub.f32 %v3178_v38, %v710_v61  ;;  %v718_v6 = vsub.f32 %v3188_v52, %v710_v61 }
 0x1e1   : > { %v714_v10 = vsub.f32 %v3180_v40, %v710_v61  ;;  %v715_v15 = vsub.f32 %v3182_v44, %v710_v61  ;;  %v814_v44 = vld [vmem:[%s3681_s2] ss:$8 sm:$0x3]  ;;  %v712_v25 = vsub.f32 %v3176_v37, %v710_v61  ;;  %v2317_v37 = vld [vmem:[%s3681_s2 + $0x3] ss:$8 sm:$0x3] }
 0x1e2   : > { %v816_v23 = vperm.slane %v814_v44, 0  ;;  %v1013_v39 = vperm.slane %v2317_v37, 0  ;;  %v817_v57 = vperm.slane %v814_v44, 1  ;;  %v1014_v59 = vperm.slane %v2317_v37, 1 }
 0x1e3   : > { %v1077_v61 = vperm.slane %v2321_v60, 0 }
 0x1fb   : > { %v722_v1 = vpop.permute.xlu0 %721 }
 0x1fc   : > { %v729_v3 = vmul.f32 %v722_v1, %v717_v62  ;;  %v728_v4 = vmul.f32 %v722_v1, %v716_v63  ;;  %v725_v5 = vmul.f32 %v722_v1, %v713_v0  ;;  %v730_v11 = vmul.f32 %v722_v1, %v718_v6  ;;  %v2325_v62 = vld [vmem:[%s3681_s2 + $0x5] ss:$8 sm:$0x3] }
 0x1fd   : > { %v726_v14 = vmul.f32 %v722_v1, %v714_v10  ;;  %v727_v17 = vmul.f32 %v722_v1, %v715_v15  ;;  %v724_v27 = vmul.f32 %v722_v1, %v712_v25  ;;  %v1141_v63 = vperm.slane %v2325_v62, 1  ;;  %v2329_v15 = vld [vmem:[%s3681_s2 + $0x6] ss:$8 sm:$0x3] }
 0x1fe   : > { %v742_v7 = vadd.f32 %v735_v2, %v729_v3  ;;  %v741_v8 = vadd.f32 %v735_v2, %v728_v4  ;;  %v738_v9 = vadd.f32 %v735_v2, %v725_v5  ;;  %v743_v38 = vadd.f32 %v735_v2, %v730_v11 }
 0x1ff   : > { %v739_v47 = vadd.f32 %v735_v2, %v726_v14  ;;  %v740_v18 = vadd.f32 %v735_v2, %v727_v17  ;;  %v737_v31 = vadd.f32 %v735_v2, %v724_v27  ;;  %v1204_v17 = vperm.slane %v2329_v15, 0 }
 0x200   : > { %v749_v12 = vmax.f32 %v742_v7, 0.0  ;;  %v748_v13 = vmax.f32 %v741_v8, 0.0  ;;  %v745_v50 = vmax.f32 %v738_v9, 0.0  ;;  %v750_v16 = vmax.f32 %v743_v38, 0.0 }
 0x201   : > { %v746_v52 = vmax.f32 %v739_v47, 0.0  ;;  %v747_v40 = vmax.f32 %v740_v18, 0.0  ;;  %v744_v34 = vmax.f32 %v737_v31, 0.0  ;;  %v2333_v38 = vld [vmem:[%s3681_s2 + $0x7] ss:$8 sm:$0x3] }
 0x202   : > { %772 = vrot.lane.b32.xlu2 %v749_v12, %s2991_s30  ;;  %770 = vrot.lane.b32.xlu1 %v748_v13, %s2991_s30  ;;  %v1140_v18 = vperm.slane %v2325_v62, 0  ;;  %v1205_v44 = vperm.slane %v2329_v15, 1 }
 0x203   : > { %754 = vrot.lane.b32.xlu0 %v745_v50, %s2991_s30 }
 0x20a   : > { %774 = vrot.lane.b32.xlu2 %v750_v16, %s2991_s30  ;;  %756 = vrot.lane.b32.xlu1 %v746_v52, %s2991_s30  ;;  %v1269_v52 = vperm.slane %v2333_v38, 1 }
 0x212   : > { %758 = vrot.lane.b32.xlu2 %v747_v40, %s2991_s30  ;;  %s2994_s30 = smov 2  }
 0x25c   : > { %v773_v19 = vpop.permute.xlu2 %772 }
 0x264   : > { %v775_v20 = vpop.permute.xlu2 %774 }
 0x265   : > { %v777_v21 = vsel %vm760_vm9, %v773_v19, %v775_v20 }
 0x266   : > { %v781_v22 = vmax.f32 %v748_v13, %v777_v21  ;;  %v1078_v13 = vperm.slane %v2321_v60, 1 }
 0x268   : > { %786 = vrot.lane.b32.xlu1 %v781_v22, %s3664_s21 }
 0x26c   : > { %v759_v41 = vpop.permute.xlu2 %758 }
 0x270   : > { %818 = vrot.lane.b32.xlu1 %v816_v23, %s2993_s14 }
 0x274   : > { %v771_v26 = vpop.permute.xlu1 %770 }
 0x275   : > { %v776_v29 = vsel %vm760_vm9, %v771_v26, %v773_v19  ;;  %v755_v32 = vpop.permute.xlu0 %754  ;;  %v2337_v19 = vld [vmem:[%s3681_s2 + $0x10] ss:$8 sm:$0x3] }
 0x276   : > { %v780_v30 = vmax.f32 %v747_v40, %v776_v29  ;;  %v1332_v22 = vperm.slane %v2337_v19, 0  ;;  %v1268_v29 = vperm.slane %v2333_v38, 0 }
 0x278   : > { %784 = vrot.lane.b32.xlu0 %v780_v30, %s3664_s21  ;;  %889 = vrot.lane.b32.xlu1 %v886_v28, %s2994_s30  ;;  %s3005_s21 = smov 113  }
 0x27c   : > { %v757_v33 = vpop.permute.xlu1 %756 }
 0x27d   : > { %v761_v35 = vsel %vm760_vm9, %v755_v32, %v757_v33  ;;  %v762_v42 = vsel %vm760_vm9, %v757_v33, %v759_v41  ;;  %vm1274_vm9 = vcmask 244736  }
 0x27e   : > { %v765_v36 = vmax.f32 %v744_v34, %v761_v35  ;;  %v766_v43 = vmax.f32 %v745_v50, %v762_v42  ;;  %v1333_v34 = vperm.slane %v2337_v19, 1 }
 0x280   : > { %1015 = vrot.lane.b32.xlu1 %v1013_v39, %s2995_s29 }
 0x2da   : > { %v787_v45 = vpop.permute.xlu1 %786 }
 0x2db   : > { %v793_v46 = vmax.f32 %v766_v43, %v787_v45 }
 0x2dd   : > { %801 = vrot.lane.b32.xlu0 %v793_v46, %s2996_s18 }
 0x2e2   : > { %v819_v2 = vpop.permute.xlu1 %818 }
 0x2e5   : > { %887 = vrot.lane.b32.xlu0 %v885_v48, %s2994_s30  ;;  %s3006_s30 = smov 125  }
 0x2ea   : > { %v785_v53 = vpop.permute.xlu0 %784  ;;  %v890_v16 = vpop.permute.xlu1 %889 }
 0x2eb   : > { %v789_v54 = vsel %vm788_vm10, %v785_v53, %v787_v45 }
 0x2ec   : > { %v792_v55 = vmax.f32 %v765_v36, %v789_v54 }
 0x2ed   : > { %953 = vrot.lane.b32.xlu0 %v950_v51, %s2997_s17 }
 0x2ee   : > { %799 = vrot.lane.b32.xlu2 %v792_v55, %s2996_s18 }
 0x2f2   : > { %v1016_v23 = vpop.permute.xlu1 %1015 }
 0x2f6   : > { %820 = vrot.lane.b32.xlu2 %v817_v57, %s2993_s14  ;;  %s3000_s14 = smov 127  }
 0x2fe   : > { %951 = vrot.lane.b32.xlu2 %v949_v58, %s2997_s17  ;;  %v828_v58 = vld [vmem:[%s3653_s7] sm:$0xf] }
 0x306   : > { %1017 = vrot.lane.b32.xlu2 %v1014_v59, %s2995_s29  ;;  %s3001_s29 = smov 126  }
 0x30e   : > { %1079 = vrot.lane.b32.xlu2 %v1077_v61, %s2996_s18 }
 0x316   : > { %1144 = vrot.lane.b32.xlu2 %v1141_v63, %s3666_s0  ;;  %s3003_s0 = smov 29  }
 0x348   : > { %v800_v0 = vpop.permute.xlu2 %799 }
 0x349   : > { %808 = vst.msk [vmem:[#allocation4] sm:$0xff] %vm807_vm12, %v800_v0  ;;  %vm1338_vm12 = vcmask 252928  }
 0x34f   : > { %v802_v1 = vpop.permute.xlu0 %801 }
 0x350   : > { %v804_v3 = vsel %vm803_vm13, %v800_v0, %v802_v1  ;;  %v3254_v4 = vld [vmem:[#allocation4] sm:$0xff]  ;;  %v821_v7 = vpop.permute.xlu2 %820 }
 0x351   : > { %810 = vst.msk [vmem:[#allocation4 + $0x8] sm:$0xff] %vm809_vm14, %v804_v3  ;;  %v826_v5 = vmul.f32 %v819_v2, %v3254_v4  ;;  %v823_v10 = vsel %vm822_vm15, %v819_v2, %v821_v7  ;;  %v1023_v37 = vmul.f32 %v1016_v23, %v3254_v4  ;;  %vm1035_vm14 = vcmask 924672  }
 0x352   : > { %vm1226_vm15 = vcmask 809984  }
 0x353   : > { %v829_v6 = vpack.c.bf16 %v826_v5, %v826_v5  ;;  %v1027_v41 = vpack.c.bf16 %v1023_v37, %v1023_v37 }
 0x355   : > { %833 = vrot.lane.b32.xlu0 %v829_v6, %s3000_s14 }
 0x357   : > { %v888_v8 = vpop.permute.xlu0 %887 }
 0x358   : > { %v3257_v9 = vld [vmem:[#allocation4 + $0x8] sm:$0xff]  ;;  %v895_v11 = vmul.f32 %v888_v8, %v3254_v4  ;;  %v952_v47 = vpop.permute.xlu2 %951  ;;  %v892_v40 = vsel %vm891_vm1, %v888_v8, %v890_v16  ;;  %vm1162_vm1 = vcmask 908288  }
 0x359   : > { %v827_v12 = vmul.f32 %v823_v10, %v3257_v9  ;;  %v896_v20 = vmul.f32 %v892_v40, %v3257_v9  ;;  %v959_v27 = vmul.f32 %v952_v47, %v3254_v4 }
 0x35a   : > { %v899_v50 = vpack.c.bf16 %v895_v11, %v895_v11 }
 0x35b   : > { %v830_v14 = vpack.c.bf16 %v827_v12, %v827_v12  ;;  %v900_v24 = vpack.c.bf16 %v896_v20, %v896_v20  ;;  %v963_v31 = vpack.c.bf16 %v959_v27, %v959_v27 }
 0x35c   : > { %903 = vrot.lane.b32.xlu2 %v899_v50, %s3001_s29 }
 0x35d   : > { %1081 = vrot.lane.b32.xlu0 %v1078_v13, %s2996_s18  ;;  %835 = vrot.lane.b32.xlu1 %v830_v14, %s3000_s14  ;;  %s3682_s18 = smov 17   ;;  %s3008_s14 = smov 99  }
 0x35f   : > { %v954_v28 = vpop.permute.xlu0 %953 }
 0x360   : > { %v1018_v21 = vpop.permute.xlu2 %1017  ;;  %v956_v32 = vsel %vm955_vm3, %v952_v47, %v954_v28  ;;  %v2310_v47 = vld [vmem:[%s3653_s7 + $0x4] sm:$0xf]  ;;  %v2318_v28 = vld [vmem:[%s3653_s7 + $0xc] sm:$0xf]  ;;  %vm1498_vm3 = vcmask 556032  }
 0x361   : > { %v1020_v25 = vsel %vm1019_vm2, %v1016_v23, %v1018_v21  ;;  %v960_v33 = vmul.f32 %v956_v32, %v3257_v9  ;;  %vm1354_vm2 = vcmask 793600  }
 0x362   : > { %v1024_v26 = vmul.f32 %v1020_v25, %v3257_v9 }
 0x363   : > { %v964_v35 = vpack.c.bf16 %v960_v33, %v960_v33 }
 0x364   : > { %1272 = vrot.lane.b32.xlu2 %v1269_v52, %s3002_s20  ;;  %v1028_v30 = vpack.c.bf16 %v1024_v26, %v1024_v26 }
 0x365   : > { %1206 = vrot.lane.b32.xlu0 %v1204_v17, %s3003_s0  ;;  %1142 = vrot.lane.b32.xlu1 %v1140_v18, %s3682_s18  ;;  %s3007_s18 = smov 111  }
 0x368   : > { %v1080_v36 = vpop.permute.xlu2 %1079 }
 0x369   : > { %v1086_v39 = vmul.f32 %v1080_v36, %v3254_v4 }
 0x36b   : > { %v1090_v42 = vpack.c.bf16 %v1086_v39, %v1086_v39 }
 0x36c   : > { %1334 = vrot.lane.b32.xlu2 %v1332_v22, %s3004_s16 }
 0x36d   : > { %905 = vrot.lane.b32.xlu0 %v900_v24, %s3001_s29  ;;  %1208 = vrot.lane.b32.xlu1 %v1205_v44, %s3003_s0  ;;  %s3683_s0 = smov 112  }
 0x370   : > { %v1145_v43 = vpop.permute.xlu2 %1144 }
 0x374   : > { %1033 = vrot.lane.b32.xlu2 %v1028_v30, %s3005_s21 }
 0x375   : > { %1270 = vrot.lane.b32.xlu1 %v1268_v29, %s3002_s20  ;;  %967 = vrot.lane.b32.xlu0 %v963_v31, %s3006_s30  ;;  %v2314_v29 = vld [vmem:[%s3653_s7 + $0x8] sm:$0xf]  ;;  %v811_v31 = vld [vmem:[%s3654_s8] sm:$0xff] }
 0x37d   : > { %1336 = vrot.lane.b32.xlu0 %v1333_v34, %s3004_s16  ;;  %969 = vrot.lane.b32.xlu1 %v964_v35, %s3006_s30  ;;  %s3010_s30 = smov 97  }
 0x385   : > { %1031 = vrot.lane.b32.xlu1 %v1027_v41, %s3005_s21  ;;  %1094 = vrot.lane.b32.xlu0 %v1090_v42, %s3683_s0  ;;  %s3009_s21 = smov 98  }
 0x3b6   : > { %v904_v45 = vpop.permute.xlu2 %903 }
 0x3be   : > { %v1273_v48 = vpop.permute.xlu2 %1272 }
 0x3c6   : > { %v1335_v60 = vpop.permute.xlu2 %1334 }
 0x3c7   : > { %v834_v46 = vpop.permute.xlu0 %833  ;;  %v1342_v16 = vmul.f32 %v1335_v60, %v3254_v4 }
 0x3c9   : > { %v1346_v21 = vpack.c.bf16 %v1342_v16, %v1342_v16 }
 0x3ce   : > { %v1034_v7 = vpop.permute.xlu2 %1033 }
 0x3cf   : > { %v1082_v49 = vpop.permute.xlu0 %1081  ;;  %v836_v51 = vpop.permute.xlu1 %835  ;;  %v1044_v38 = vsel %vm499_vm0, %v1034_v7, 0 }
 0x3d0   : > { %v1083_v53 = vsel %vm803_vm13, %v1080_v36, %v1082_v49  ;;  %v838_v54 = vsel %vm837_vm4, %v834_v46, %v836_v51  ;;  %v847_v57 = vsel %vm499_vm0, %v836_v51, 0  ;;  %vm971_vm13 = vcmask 1022976  }
 0x3d1   : > { %v1087_v55 = vmul.f32 %v1083_v53, %v3257_v9  ;;  %v844_v56 = vsel %vm499_vm0, %v838_v54, 0  ;;  %vm2159_vm4 = vcmask 73728  }
 0x3d2   : > { %856 = vmatpush.bf16.msra.mxu1 %v844_v56  ;;  %v2326_v56 = vld [vmem:[%s3653_s7 + $0x14] sm:$0xf] }
 0x3d3   : > { %v1091_v59 = vpack.c.bf16 %v1087_v55, %v1087_v55 }
 0x3d5   : > { %2307 = vmatmul.msk.bf16.vlgmr.msra.gmra.mxu1 %vm839_vm5, %v828_v58  ;;  %1096 = vrot.lane.b32.xlu1 %v1091_v59, %s3683_s0 }
 0x3d6   : > { %869 = vmatpush.bf16.msrb.mxu1 %v847_v57 }
 0x3d7   : > { %v1207_v61 = vpop.permute.xlu0 %1206  ;;  %v1143_v62 = vpop.permute.xlu1 %1142 }
 0x3d8   : > { %v1214_v63 = vmul.f32 %v1207_v61, %v3254_v4  ;;  %v1147_v0 = vsel %vm1146_vm6, %v1143_v62, %v1145_v43  ;;  %v1150_v1 = vmul.f32 %v1143_v62, %v3254_v4 }
 0x3d9   : > { %v1151_v2 = vmul.f32 %v1147_v0, %v3257_v9 }
 0x3da   : > { %v1218_v3 = vpack.c.bf16 %v1214_v63, %v1214_v63  ;;  %v1154_v5 = vpack.c.bf16 %v1150_v1, %v1150_v1  ;;  %v2334_v1 = vld [vmem:[%s3653_s7 + $0x1c] sm:$0xf] }
 0x3db   : > { %v1155_v6 = vpack.c.bf16 %v1151_v2, %v1151_v2  ;;  %v2727_v2 = vld [vmem:[%s3655_s9 + $0x38] sm:$0xff] }
 0x3dc   : > { %1158 = vrot.lane.b32.xlu2 %v1154_v5, %s3007_s18  ;;  %v2726_v5 = vld [vmem:[%s3655_s9 + $0x30] sm:$0xff] }
 0x3dd   : > { %1222 = vrot.lane.b32.xlu1 %v1218_v3, %s3008_s14  ;;  %1160 = vrot.lane.b32.xlu0 %v1155_v6, %s3007_s18 }
 0x3df   : > { %v906_v8 = vpop.permute.xlu0 %905  ;;  %v1209_v10 = vpop.permute.xlu1 %1208 }
 0x3e0   : > { %v1211_v11 = vsel %vm1210_vm7, %v1207_v61, %v1209_v10  ;;  %v916_v12 = vsel %vm499_vm0, %v906_v8, 0  ;;  %v908_v13 = vsel %vm907_vm8, %v904_v45, %v906_v8  ;;  %v2322_v45 = vld [vmem:[%s3653_s7 + $0x10] sm:$0xf] }
 0x3e1   : > { %v1215_v50 = vmul.f32 %v1211_v11, %v3257_v9  ;;  %938 = vmatpush.bf16.msra.mxu3 %v916_v12  ;;  %v913_v14 = vsel %vm499_vm0, %v908_v13, 0 }
 0x3e2   : > { %925 = vmatpush.bf16.msra.mxu2 %v913_v14 }
 0x3e3   : > { %v1219_v15 = vpack.c.bf16 %v1215_v50, %v1215_v50 }
 0x3e4   : > { %2312 = vmatmul.msk.bf16.vlgmr.msra.gmra.mxu3 %vm839_vm5, %v2310_v47 }
 0x3e5   : > { %1066 = vmatpush.bf16.msrb.mxu3 %v1044_v38  ;;  %2308 = vmatmul.msk.bf16.vlgmr.msrb.gmra.mxu1 %vm839_vm5, %v828_v58  ;;  %v2330_v58 = vld [vmem:[%s3653_s7 + $0x18] sm:$0xf] }
 0x3e6   : > { %1224 = vrot.lane.b32.xlu2 %v1219_v15, %s3008_s14  ;;  %2311 = vmatmul.msk.bf16.vlgmr.msra.gmra.mxu2 %vm839_vm5, %v2310_v47  ;;  %v2338_v15 = vld [vmem:[%s3653_s7 + $0x20] sm:$0xf] }
 0x3e7   : > { %v1271_v52 = vpop.permute.xlu1 %1270  ;;  %v968_v17 = vpop.permute.xlu0 %967 }
 0x3e8   : > { %v1275_v18 = vsel %vm1274_vm9, %v1271_v52, %v1273_v48  ;;  %v1278_v40 = vmul.f32 %v1271_v52, %v3254_v4 }
 0x3e9   : > { %v1279_v19 = vmul.f32 %v1275_v18, %v3257_v9 }
 0x3ea   : > { %v1282_v20 = vpack.c.bf16 %v1278_v40, %v1278_v40 }
 0x3eb   : > { %v1283_v22 = vpack.c.bf16 %v1279_v19, %v1279_v19 }
 0x3ec   : > { %1286 = vrot.lane.b32.xlu0 %v1282_v20, %s3009_s21 }
 0x3ed   : > { %1288 = vrot.lane.b32.xlu1 %v1283_v22, %s3009_s21 }
 0x3ee   : > { %1350 = vrot.lane.b32.xlu2 %v1346_v21, %s3010_s30 }
 0x3ef   : > { %v1337_v44 = vpop.permute.xlu0 %1336  ;;  %v970_v23 = vpop.permute.xlu1 %969 }
 0x3f0   : > { %v1339_v24 = vsel %vm1338_vm12, %v1335_v60, %v1337_v44  ;;  %v980_v25 = vsel %vm499_vm0, %v970_v23, 0  ;;  %v972_v26 = vsel %vm971_vm13, %v968_v17, %v970_v23 }
 0x3f1   : > { %v1343_v4 = vmul.f32 %v1339_v24, %v3257_v9  ;;  %1002 = vmatpush.bf16.msra.mxu1 %v980_v25  ;;  %v977_v27 = vsel %vm499_vm0, %v972_v26, 0 }
 0x3f2   : > { %989 = vmatpush.bf16.msra.mxu0 %v977_v27 }
 0x3f3   : > { %v1347_v30 = vpack.c.bf16 %v1343_v4, %v1343_v4 }
 0x3f4   : > { %2320 = vmatmul.msk.bf16.vlgmr.msrb.gmra.mxu3 %vm839_vm5, %v2318_v28 }
 0x3f5   : > { %2315 = vmatmul.msk.bf16.vlgmr.msra.gmra.mxu0 %vm839_vm5, %v2314_v29  ;;  %2316 = vmatmul.msk.bf16.vlgmr.msra.gmra.mxu1 %vm839_vm5, %v2314_v29  ;;  %v2725_v29 = vld [vmem:[%s3655_s9 + $0x28] sm:$0xff] }
 0x3f6   : > { %877 = vperm.xlu1 %2884, %v811_v31   ;;  %1352 = vrot.lane.b32.xlu0 %v1347_v30, %s3010_s30 }
 0x3f7   : > { %v1032_v9 = vpop.permute.xlu1 %1031  ;;  %v1095_v36 = vpop.permute.xlu0 %1094 }
 0x3f8   : > { %v1036_v32 = vsel %vm1035_vm14, %v1032_v9, %v1034_v7  ;;  %v2724_v9 = vld [vmem:[%s3655_s9 + $0x20] sm:$0xff] }
 0x3f9   : > { %v1041_v33 = vsel %vm499_vm0, %v1036_v32, 0  ;;  %v2414_v32 = vld [vmem:[%s3655_s9 + $0xc4] sm:$0x3] }
 0x3fa   : > { %1053 = vmatpush.bf16.msrb.mxu2 %v1041_v33  ;;  %v1614_v33 = vunpack.c.l.b16 %v2414_v32  ;;  %v2765_v32 = vld [vmem:[%s3655_s9 + $0x174] sm:$0xff] }
 0x3fd   : > { %2319 = vmatmul.msk.bf16.vlgmr.msrb.gmra.mxu2 %vm839_vm5, %v2318_v28  ;;  %v1422_v28 = vld [vmem:[%s3655_s9 + $0x60] sm:$0x3] }
 0x3fe   : > { %v1472_v30 = vunpack.c.l.b16 %v1422_v28 }
 0x400   : > { %v1485_v31 = vpack.c.b16 %v1472_v30, %v1472_v30 }
 0x436   : > { %v1159_v34 = vpop.permute.xlu2 %1158 }
 0x440   : > { %v1225_v35 = vpop.permute.xlu2 %1224 }
 0x441   : > { %v1235_v42 = vsel %vm499_vm0, %v1225_v35, 0 }
 0x447   : > { %v1097_v37 = vpop.permute.xlu1 %1096 }
 0x448   : > { %v1107_v39 = vsel %vm499_vm0, %v1097_v37, 0  ;;  %v1099_v41 = vsel %vm788_vm10, %v1095_v36, %v1097_v37  ;;  %vm1290_vm10 = vcmask 801792   ;;  %v1351_v6 = vpop.permute.xlu2 %1350  ;;  %v2731_v37 = vld [vmem:[%s3655_s9 + $0x58] sm:$0xff] }
 0x449   : > { %1129 = vmatpush.bf16.msrb.mxu1 %v1107_v39  ;;  %v1104_v43 = vsel %vm499_vm0, %v1099_v41, 0  ;;  %v2739_v39 = vld [vmem:[%s3655_s9 + $0x9c] sm:$0xff] }
 0x44a   : > { %1116 = vmatpush.bf16.msrb.mxu0 %v1104_v43  ;;  %v2723_v41 = vld [vmem:[%s3655_s9 + $0x18] sm:$0xff]  ;;  %v2730_v43 = vld [vmem:[%s3655_s9 + $0x50] sm:$0xff] }
 0x44c   : > { %2324 = vmatmul.msk.bf16.vlgmr.msrb.gmra.mxu1 %vm839_vm5, %v2322_v45 }
 0x44d   : > { %1257 = vmatpush.bf16.msra.mxu1 %v1235_v42  ;;  %2323 = vmatmul.msk.bf16.vlgmr.msrb.gmra.mxu0 %vm839_vm5, %v2322_v45  ;;  %v2743_v42 = vld [vmem:[%s3655_s9 + $0xbc] sm:$0xff]  ;;  %v2738_v45 = vld [vmem:[%s3655_s9 + $0x94] sm:$0xff] }
 0x44f   : > { %v1223_v46 = vpop.permute.xlu1 %1222  ;;  %v1161_v48 = vpop.permute.xlu0 %1160 }
 0x450   : > { %v1227_v49 = vsel %vm1226_vm15, %v1223_v46, %v1225_v35  ;;  %v1163_v51 = vsel %vm1162_vm1, %v1159_v34, %v1161_v48  ;;  %v1171_v53 = vsel %vm499_vm0, %v1161_v48, 0  ;;  %v1627_v35 = vpack.c.b16 %v1614_v33, %v1614_v33  ;;  %v2722_v46 = vld [vmem:[%s3655_s9 + $0x10] sm:$0xff] }
 0x451   : > { %v1232_v54 = vsel %vm499_vm0, %v1227_v49, 0  ;;  %v1168_v55 = vsel %vm499_vm0, %v1163_v51, 0  ;;  %1193 = vmatpush.bf16.msra.mxu3 %v1171_v53  ;;  %v2742_v48 = vld [vmem:[%s3655_s9 + $0xb4] sm:$0xff]  ;;  %v2729_v49 = vld [vmem:[%s3655_s9 + $0x48] sm:$0xff] }
 0x452   : > { %v858_v57 = vpop.f32.mrf.mxu1  ;;  %1180 = vmatpush.bf16.msra.mxu2 %v1168_v55  ;;  %1244 = vmatpush.bf16.msra.mxu0 %v1232_v54  ;;  %v2737_v51 = vld [vmem:[%s3655_s9 + $0x8c] sm:$0xff]  ;;  %v2488_v55 = vld [vmem:[%s3655_s9 + $0x128] sm:$0x3] }
 0x453   : > { %v2721_v53 = vld [vmem:[%s3655_s9 + $0x8] sm:$0xff] }
 0x454   : > { %2328 = vmatmul.msk.bf16.vlgmr.msra.gmra.mxu3 %vm839_vm5, %v2326_v56  ;;  %v2741_v54 = vld [vmem:[%s3655_s9 + $0xac] sm:$0xff] }
 0x455   : > { %2327 = vmatmul.msk.bf16.vlgmr.msra.gmra.mxu2 %vm839_vm5, %v2326_v56  ;;  %v1753_v56 = vunpack.c.l.b16 %v2488_v55  ;;  %v2756_v33 = vld [vmem:[%s3655_s9 + $0x12c] sm:$0xff] }
 0x45a   : > { %v860_v59 = vpop.f32.mrf.mxu1 }
 0x45b   : > { %v2720_v59 = vld [vmem:[%s3655_s9] sm:$0xff] }
 0x45c   : > { %2332 = vmatmul.msk.bf16.vlgmr.msra.gmra.mxu1 %vm839_vm5, %v2330_v58 }
 0x45d   : > { %2331 = vmatmul.msk.bf16.vlgmr.msra.gmra.mxu0 %vm839_vm5, %v2330_v58  ;;  %v2736_v58 = vld [vmem:[%s3655_s9 + $0x84] sm:$0xff] }
 0x45e   : > { %v1287_v60 = vpop.permute.xlu0 %1286 }
 0x45f   : > { %v1289_v61 = vpop.permute.xlu1 %1288 }
 0x460   : > { %v1291_v62 = vsel %vm1290_vm10, %v1287_v60, %v1289_v61  ;;  %v1299_v63 = vsel %vm499_vm0, %v1289_v61, 0  ;;  %v2751_v60 = vld [vmem:[%s3655_s9 + $0x100] sm:$0xff]  ;;  %v1766_v61 = vpack.c.b16 %v1753_v56, %v1753_v56 }
 0x461   : > { %v1296_v0 = vsel %vm499_vm0, %v1291_v62, 0  ;;  %1321 = vmatpush.bf16.msrb.mxu3 %v1299_v63  ;;  %v2740_v63 = vld [vmem:[%s3655_s9 + $0xa4] sm:$0xff] }
 0x462   : > { %v871_v3 = vpop.f32.mrf.mxu1  ;;  %1308 = vmatpush.bf16.msrb.mxu2 %v1296_v0  ;;  %v2735_v0 = vld [vmem:[%s3655_s9 + $0x7c] sm:$0xff] }
 0x464   : > { %2336 = vmatmul.msk.bf16.vlgmr.msrb.gmra.mxu3 %vm839_vm5, %v2334_v1 }
 0x465   : > { %2335 = vmatmul.msk.bf16.vlgmr.msrb.gmra.mxu2 %vm839_vm5, %v2334_v1  ;;  %v2763_v1 = vld [vmem:[%s3655_s9 + $0x164] sm:$0xff] }
 0x466   : > { %1506 = vmatpush.bf16.msra.mxu2 %v2727_v2  ;;  %v2750_v2 = vld [vmem:[%s3655_s9 + $0xf8] sm:$0xff] }
 0x467   : > { %v940_v7 = vpop.f32.mrf.mxu3 }
 0x468   : > { %v878_v8 = vpop.permute.xlu1 %877  ;;  %v1353_v10 = vpop.permute.xlu0 %1352 }
 0x469   : > { %v880_v11 = vadd.f32 %v878_v8, %v858_v57  ;;  %v881_v12 = vadd.f32 %v878_v8, %v871_v3  ;;  %v1355_v13 = vsel %vm1354_vm2, %v1351_v6, %v1353_v10  ;;  %v1363_v50 = vsel %vm499_vm0, %v1353_v10, 0  ;;  %v927_v14 = vpop.f32.mrf.mxu2  ;;  %v2728_v57 = vld [vmem:[%s3655_s9 + $0x40] sm:$0xff]  ;;  %v2754_v8 = vld [vmem:[%s3655_s9 + $0x118] sm:$0xff] }
 0x46a   : > { %1507 = vmatpush.bf16.msra.mxu2 %v2726_v5  ;;  %v1360_v38 = vsel %vm499_vm0, %v1355_v13, 0  ;;  %1385 = vmatpush.bf16.msrb.mxu1 %v1363_v50  ;;  %v873_v47 = vpop.f32.mrf.mxu1  ;;  %vm1502_vm0 = vcmask 1041408   ;;  %v2755_v3 = vld [vmem:[%s3655_s9 + $0x120] sm:$0xff]  ;;  %v2734_v5 = vld [vmem:[%s3655_s9 + $0x74] sm:$0xff]  ;;  %v2748_v50 = vld [vmem:[%s3655_s9 + $0xe8] sm:$0xff] }
 0x46b   : > { %v944_v16 = vadd.f32 %v927_v14, %v880_v11  ;;  %1372 = vmatpush.bf16.msrb.mxu0 %v1360_v38  ;;  %v945_v52 = vadd.f32 %v940_v7, %v881_v12  ;;  %v1504_v34 = vsel %vm1502_vm0, %v1485_v31, 0  ;;  %v1644_v36 = vsel %vm1502_vm0, %v1627_v35, 0  ;;  %v2762_v6 = vld [vmem:[%s3655_s9 + $0x15c] sm:$0xff]  ;;  %v2749_v7 = vld [vmem:[%s3655_s9 + $0xf0] sm:$0xff]  ;;  %v2562_v14 = vld [vmem:[%s3655_s9 + $0x18c] sm:$0x3] }
 0x46c   : > { %1522 = vmatpush.bf16.msra.mxu3 %v1504_v34  ;;  %v1783_v62 = vsel %vm1502_vm0, %v1766_v61, 0  ;;  %v2733_v12 = vld [vmem:[%s3655_s9 + $0x6c] sm:$0xff]  ;;  %v2761_v13 = vld [vmem:[%s3655_s9 + $0x154] sm:$0xff]  ;;  %v1890_v47 = vunpack.c.l.b16 %v2562_v14 }
 0x46d   : > { %2340 = vmatmul.msk.bf16.vlgmr.msrb.gmra.mxu1 %vm839_vm5, %v2338_v15  ;;  %v2753_v38 = vld [vmem:[%s3655_s9 + $0x110] sm:$0xff] }
 0x46e   : > { %2339 = vmatmul.msk.bf16.vlgmr.msrb.gmra.mxu0 %vm839_vm5, %v2338_v15  ;;  %1508 = vmatpush.bf16.msra.mxu2 %v2725_v29  ;;  %v2732_v15 = vld [vmem:[%s3655_s9 + $0x64] sm:$0xff]  ;;  %v2757_v31 = vld [vmem:[%s3655_s9 + $0x134] sm:$0xff]  ;;  %v2764_v35 = vld [vmem:[%s3655_s9 + $0x16c] sm:$0xff] }
 0x46f   : > { %v942_v17 = vpop.f32.mrf.mxu3  ;;  %1662 = vmatpush.bf16.msra.mxu1 %v1644_v36  ;;  %1646 = vmatpush.bf16.msra.mxu0 %v2739_v39  ;;  %v2772_v14 = vld [vmem:[%s3655_s9 + $0x1b0] sm:$0xff] }
 0x470   : > { %1523 = vmatpush.bf16.msra.mxu3 %v2731_v37  ;;  %v2747_v17 = vld [vmem:[%s3655_s9 + $0xe0] sm:$0xff] }
 0x471   : > { %v929_v18 = vpop.f32.mrf.mxu2 }
 0x472   : > { %v991_v40 = vpop.f32.mrf.mxu0  ;;  %v1004_v19 = vpop.f32.mrf.mxu1  ;;  %1509 = vmatpush.bf16.msra.mxu2 %v2724_v9  ;;  %v2744_v9 = vld [vmem:[%s3655_s9 + $0xc8] sm:$0xff] }
 0x473   : > { %v1008_v20 = vadd.f32 %v991_v40, %v944_v16  ;;  %v1009_v21 = vadd.f32 %v1004_v19, %v945_v52  ;;  %1663 = vmatpush.bf16.msra.mxu1 %v2743_v42  ;;  %1647 = vmatpush.bf16.msra.mxu0 %v2738_v45  ;;  %v2760_v16 = vld [vmem:[%s3655_s9 + $0x14c] sm:$0xff]  ;;  %v1903_v52 = vpack.c.b16 %v1890_v47, %v1890_v47 }
 0x474   : > { %1524 = vmatpush.bf16.msra.mxu3 %v2730_v43  ;;  %v2752_v40 = vld [vmem:[%s3655_s9 + $0x108] sm:$0xff] }
 0x475   : > { %v1920_v18 = vsel %vm1502_vm0, %v1903_v52, 0 }
 0x476   : > { %1510 = vmatpush.bf16.msra.mxu2 %v2723_v41 }
 0x477   : > { %v1068_v22 = vpop.f32.mrf.mxu3  ;;  %1664 = vmatpush.bf16.msra.mxu1 %v2742_v48  ;;  %1648 = vmatpush.bf16.msra.mxu0 %v2737_v51 }
 0x478   : > { %v3363_v44 = vadd.f32 %v1068_v22, %v1009_v21  ;;  %1525 = vmatpush.bf16.msra.mxu3 %v2729_v49  ;;  %v2759_v21 = vld [vmem:[%s3655_s9 + $0x144] sm:$0xff]  ;;  %v2746_v22 = vld [vmem:[%s3655_s9 + $0xd8] sm:$0xff] }
 0x47a   : > { %v1006_v23 = vpop.f32.mrf.mxu1  ;;  %v993_v24 = vpop.f32.mrf.mxu0  ;;  %1511 = vmatpush.bf16.msra.mxu2 %v2722_v46  ;;  %v2636_v46 = vld [vmem:[%s3655_s9 + $0x1f0] sm:$0x3] }
 0x47b   : > { %1665 = vmatpush.bf16.msra.mxu1 %v2741_v54  ;;  %1649 = vmatpush.bf16.msra.mxu0 %v2736_v58  ;;  %v2767_v23 = vld [vmem:[%s3655_s9 + $0x184] sm:$0xff]  ;;  %v2758_v24 = vld [vmem:[%s3655_s9 + $0x13c] sm:$0xff] }
 0x47c   : > { %1526 = vmatpush.bf16.msra.mxu3 %v2728_v57 }
 0x47e   : > { %1512 = vmatpush.bf16.msra.mxu2 %v2721_v53  ;;  %v2027_v53 = vunpack.c.l.b16 %v2636_v46 }
 0x47f   : > { %v1070_v25 = vpop.f32.mrf.mxu3  ;;  %1666 = vmatpush.bf16.msra.mxu1 %v2740_v63  ;;  %1650 = vmatpush.bf16.msra.mxu0 %v2735_v0  ;;  %v2775_v63 = vld [vmem:[%s3655_s9 + $0x1c8] sm:$0xff] }
 0x480   : > { %v1055_v26 = vpop.f32.mrf.mxu2  ;;  %1785 = vmatpush.bf16.msrb.mxu3 %v2751_v60 }
 0x481   : > { %v3365_v4 = vadd.f32 %v1055_v26, %v1008_v20  ;;  %v2745_v26 = vld [vmem:[%s3655_s9 + $0xd0] sm:$0xff] }
 0x482   : > { %1513 = vmatpush.bf16.msra.mxu2 %v2720_v59 }
 0x483   : > { %1922 = vmatpush.bf16.msrb.mxu1 %v2763_v1  ;;  %1651 = vmatpush.bf16.msra.mxu0 %v2734_v5 }
 0x484   : > { %1786 = vmatpush.bf16.msrb.mxu3 %v2750_v2 }
 0x486   : > { %1801 = vmatpush.bf16.msrb.mxu2 %v1783_v62 }
 0x487   : > { %1923 = vmatpush.bf16.msrb.mxu1 %v2762_v6  ;;  %1652 = vmatpush.bf16.msra.mxu0 %v2733_v12  ;;  %v2778_v12 = vld [vmem:[%s3655_s9 + $0x1e0] sm:$0xff] }
 0x488   : > { %v1057_v27 = vpop.f32.mrf.mxu2  ;;  %1787 = vmatpush.bf16.msrb.mxu3 %v2749_v7 }
 0x489   : > { %v2766_v27 = vld [vmem:[%s3655_s9 + $0x17c] sm:$0xff] }
 0x48a   : > { %1802 = vmatpush.bf16.msrb.mxu2 %v2755_v3 }
 0x48b   : > { %1924 = vmatpush.bf16.msrb.mxu1 %v2761_v13  ;;  %1653 = vmatpush.bf16.msra.mxu0 %v2732_v15  ;;  %v2773_v13 = vld [vmem:[%s3655_s9 + $0x1b8] sm:$0xff]  ;;  %v2771_v15 = vld [vmem:[%s3655_s9 + $0x1a8] sm:$0xff] }
 0x48c   : > { %1788 = vmatpush.bf16.msrb.mxu3 %v2748_v50  ;;  %v2777_v50 = vld [vmem:[%s3655_s9 + $0x1d8] sm:$0xff] }
 0x48e   : > { %1803 = vmatpush.bf16.msrb.mxu2 %v2754_v8  ;;  %v2779_v8 = vld [vmem:[%s3655_s9 + $0x1e8] sm:$0xff] }
 0x48f   : > { %1925 = vmatpush.bf16.msrb.mxu1 %v2760_v16  ;;  %1938 = vmatpush.bf16.msrb.mxu0 %v1920_v18  ;;  %v2770_v18 = vld [vmem:[%s3655_s9 + $0x1a0] sm:$0xff] }
 0x490   : > { %1789 = vmatpush.bf16.msrb.mxu3 %v2747_v17 }
 0x492   : > { %1804 = vmatpush.bf16.msrb.mxu2 %v2753_v38  ;;  %v2776_v38 = vld [vmem:[%s3655_s9 + $0x1d0] sm:$0xff] }
 0x493   : > { %1926 = vmatpush.bf16.msrb.mxu1 %v2759_v21  ;;  %1939 = vmatpush.bf16.msrb.mxu0 %v2767_v23 }
 0x494   : > { %1790 = vmatpush.bf16.msrb.mxu3 %v2746_v22  ;;  %v2099_v22 = vld [vmem:[%s3657_s11 + $0x30] sm:$0x3] }
 0x495   : > { %v2126_v23 = vunpack.c.l.b16 %v2099_v22 }
 0x496   : > { %1805 = vmatpush.bf16.msrb.mxu2 %v2752_v40  ;;  %v2769_v40 = vld [vmem:[%s3655_s9 + $0x198] sm:$0xff] }
 0x497   : > { %1927 = vmatpush.bf16.msrb.mxu1 %v2758_v24  ;;  %1940 = vmatpush.bf16.msrb.mxu0 %v2766_v27  ;;  %v2133_v24 = vpack.c.b16 %v2126_v23, %v2126_v23  ;;  %v2784_v27 = vld [vmem:[%s3657_s11 + $0x20] sm:$0xff] }
 0x498   : > { %1791 = vmatpush.bf16.msrb.mxu3 %v2745_v26  ;;  %v2785_v26 = vld [vmem:[%s3657_s11 + $0x28] sm:$0xff] }
 0x49b   : > { %1928 = vmatpush.bf16.msrb.mxu1 %v2757_v31  ;;  %1941 = vmatpush.bf16.msrb.mxu0 %v2765_v32 }
 0x49c   : > { %1792 = vmatpush.bf16.msrb.mxu3 %v2744_v9  ;;  %v2781_v9 = vld [vmem:[%s3657_s11 + $0x8] sm:$0xff] }
 0x49f   : > { %1929 = vmatpush.bf16.msrb.mxu1 %v2756_v33  ;;  %1942 = vmatpush.bf16.msrb.mxu0 %v2764_v35 }
 0x4c9   : > { %v1131_v10 = vpop.f32.mrf.mxu1 }
 0x4ca   : > { %v1118_v11 = vpop.f32.mrf.mxu0  ;;  %v1136_v36 = vadd.f32 %v1131_v10, %v3363_v44  ;;  %v2774_v10 = vld [vmem:[%s3655_s9 + $0x1c0] sm:$0xff] }
 0x4cb   : > { %v1135_v39 = vadd.f32 %v1118_v11, %v3365_v4  ;;  %v2040_v4 = vpack.c.b16 %v2027_v53, %v2027_v53 }
 0x4cd   : > { %v2057_v1 = vsel %vm1502_vm0, %v2040_v4, 0 }
 0x4d1   : > { %v1133_v19 = vpop.f32.mrf.mxu1 }
 0x4d2   : > { %v1120_v20 = vpop.f32.mrf.mxu0  ;;  %v2768_v19 = vld [vmem:[%s3655_s9 + $0x190] sm:$0xff] }
 0x4d7   : > { %v1195_v25 = vpop.f32.mrf.mxu3 }
 0x4d8   : > { %v1182_v28 = vpop.f32.mrf.mxu2  ;;  %v1200_v42 = vadd.f32 %v1195_v25, %v1136_v36  ;;  %v2144_v25 = vsel %vm1502_vm0, %v2133_v24, 0 }
 0x4d9   : > { %v1259_v29 = vpop.f32.mrf.mxu1  ;;  %v1199_v45 = vadd.f32 %v1182_v28, %v1135_v39  ;;  %v2783_v28 = vld [vmem:[%s3657_s11 + $0x18] sm:$0xff] }
 0x4da   : > { %v1246_v30 = vpop.f32.mrf.mxu0  ;;  %v1264_v48 = vadd.f32 %v1259_v29, %v1200_v42  ;;  %v2782_v29 = vld [vmem:[%s3657_s11 + $0x10] sm:$0xff] }
 0x4db   : > { %v1263_v49 = vadd.f32 %v1246_v30, %v1199_v45 }
 0x4df   : > { %v1197_v34 = vpop.f32.mrf.mxu3 }
 0x4e0   : > { %v1184_v37 = vpop.f32.mrf.mxu2  ;;  %v2780_v34 = vld [vmem:[%s3657_s11] sm:$0xff] }
 0x4e1   : > { %v1261_v41 = vpop.f32.mrf.mxu1 }
 0x4e2   : > { %v1248_v43 = vpop.f32.mrf.mxu0 }
 0x4e7   : > { %v1323_v51 = vpop.f32.mrf.mxu3 }
 0x4e8   : > { %v1328_v54 = vadd.f32 %v1323_v51, %v1264_v48  ;;  %v1310_v55 = vpop.f32.mrf.mxu2 }
 0x4e9   : > { %v1327_v44 = vadd.f32 %v1310_v55, %v1263_v49  ;;  %v1395_v49 = vld [vmem:[%s3656_s10] sm:$0x1] }
 0x4ea   : > { %v1387_v56 = vpop.f32.mrf.mxu1 }
 0x4eb   : > { %v1392_v57 = vadd.f32 %v1387_v56, %v1328_v54  ;;  %v1374_v58 = vpop.f32.mrf.mxu0 }
 0x4ec   : > { %v1391_v59 = vadd.f32 %v1374_v58, %v1327_v44 }
 0x4ed   : > { %v1394_v60 = vmax.f32 %v1392_v57, 0.0 }
 0x4ee   : > { %v1393_v61 = vmax.f32 %v1391_v59, 0.0 }
 0x4ef   : > { %v1397_v62 = vpack.c.bf16 %v1394_v60, %v1394_v60  ;;  %v1325_v0 = vpop.f32.mrf.mxu3 }
 0x4f0   : > { %v1396_v2 = vpack.c.bf16 %v1393_v61, %v1393_v61  ;;  %v1312_v3 = vpop.f32.mrf.mxu2 }
 0x4f1   : > { %v1562_v5 = vshrl.u32 %v1397_v62, 16  ;;  %2389 = vmatmul.msk.bf16.vlgmr.msra.gmra.mxu3 %vm1498_vm3, %v1397_v62  ;;  %v1702_v16 = vrot.slane %v1397_v62, 1  ;;  %v1976_v20 = vrot.slane %v1397_v62, 2  ;;  %v2100_v3 = vld [vmem:[%s3658_s12] sm:$0x1] }
 0x4f2   : > { %1514 = vmatmul.bf16.vlgmr.msra.gmra.mxu2 %v1396_v2  ;;  %v1560_v6 = vshrl.u32 %v1396_v2, 16  ;;  %v1389_v7 = vpop.f32.mrf.mxu1  ;;  %2075 = vmatpush.bf16.msra.mxu3 %v2057_v1  ;;  %v1701_v47 = vrot.slane %v1396_v2, 1  ;;  %v1975_v21 = vrot.slane %v1396_v2, 2 }
 0x4f3   : > { %2463 = vmatmul.msk.bf16.vlgmr.msra.gmra.mxu1 %vm1498_vm3, %v1562_v5  ;;  %2059 = vmatpush.bf16.msra.mxu2 %v2775_v63  ;;  %v1376_v11 = vpop.f32.mrf.mxu0  ;;  %v1839_v17 = vrot.slane %v1562_v5, 1 }
 0x4f4   : > { %1654 = vmatmul.bf16.vlgmr.msra.gmra.mxu0 %v1560_v6  ;;  %v1838_v52 = vrot.slane %v1560_v6, 1 }
 0x4f5   : > { %2147 = vmatpush.bf16.msra.mxu0 %v2144_v25 }
 0x4f6   : > { %2076 = vmatpush.bf16.msra.mxu3 %v2779_v8 }
 0x4f7   : > { %2060 = vmatpush.bf16.msra.mxu2 %v2774_v10 }
 0x4f9   : > { %2148 = vmatpush.bf16.msra.mxu0 %v2785_v26 }
 0x4fa   : > { %2077 = vmatpush.bf16.msra.mxu3 %v2778_v12 }
 0x4fb   : > { %2061 = vmatpush.bf16.msra.mxu2 %v2773_v13 }
 0x4fd   : > { %2149 = vmatpush.bf16.msra.mxu0 %v2784_v27 }
 0x4fe   : > { %2078 = vmatpush.bf16.msra.mxu3 %v2777_v50 }
 0x4ff   : > { %2062 = vmatpush.bf16.msra.mxu2 %v2772_v14 }
 0x501   : > { %1793 = vmatmul.bf16.vlgmr.msrb.gmra.mxu3 %v1701_v47  ;;  %2150 = vmatpush.bf16.msra.mxu0 %v2783_v28 }
 0x502   : > { %2537 = vmatmul.msk.bf16.vlgmr.msrb.gmra.mxu2 %vm1498_vm3, %v1702_v16  ;;  %2079 = vmatpush.bf16.msra.mxu3 %v2776_v38 }
 0x503   : > { %1930 = vmatmul.bf16.vlgmr.msrb.gmra.mxu1 %v1838_v52  ;;  %2063 = vmatpush.bf16.msra.mxu2 %v2771_v15 }
 0x504   : > { %2611 = vmatmul.msk.bf16.vlgmr.msrb.gmra.mxu0 %vm1498_vm3, %v1839_v17 }
 0x505   : > { %2151 = vmatpush.bf16.msra.mxu0 %v2782_v29 }
 0x507   : > { %2064 = vmatpush.bf16.msra.mxu2 %v2770_v18 }
 0x509   : > { %2152 = vmatpush.bf16.msra.mxu0 %v2781_v9 }
 0x50b   : > { %2065 = vmatpush.bf16.msra.mxu2 %v2769_v40 }
 0x50d   : > { %2153 = vmatpush.bf16.msra.mxu0 %v2780_v34 }
 0x50f   : > { %2066 = vmatpush.bf16.msra.mxu2 %v2768_v19 }
 0x511   : > { %2685 = vmatmul.msk.bf16.vlgmr.msra.gmra.mxu3 %vm1498_vm3, %v1976_v20 }
 0x512   : > { %2067 = vmatmul.bf16.vlgmr.msra.gmra.mxu2 %v1975_v21 }
 0x570   : > { %v1668_v30 = vpop.f32.mrf.mxu1 }
 0x571   : > { %v1655_v31 = vpop.f32.mrf.mxu0 }
 0x572   : > { %v1669_v44 = vadd.f32 %v1668_v30, %v1655_v31 }
 0x574   : > { %v1528_v32 = vpop.f32.mrf.mxu3 }
 0x575   : > { %v1515_v33 = vpop.f32.mrf.mxu2 }
 0x576   : > { %v1529_v46 = vadd.f32 %v1528_v32, %v1515_v33 }
 0x578   : > { %v1670_v35 = vpop.f32.mrf.mxu1  ;;  %v1532_v53 = vadd.f32 %v1529_v46, %v1395_v49 }
 0x579   : > { %v1657_v36 = vpop.f32.mrf.mxu0 }
 0x57a   : > { %v1672_v57 = vadd.f32 %v1669_v44, %v1532_v53 }
 0x57c   : > { %v1530_v37 = vpop.f32.mrf.mxu3 }
 0x57d   : > { %v1517_v39 = vpop.f32.mrf.mxu2 }
 0x580   : > { %v1931_v41 = vpop.f32.mrf.mxu1 }
 0x581   : > { %v1944_v42 = vpop.f32.mrf.mxu0 }
 0x582   : > { %v1945_v4 = vadd.f32 %v1944_v42, %v1931_v41 }
 0x584   : > { %v1794_v43 = vpop.f32.mrf.mxu3 }
 0x585   : > { %v1807_v45 = vpop.f32.mrf.mxu2 }
 0x586   : > { %v1808_v56 = vadd.f32 %v1807_v45, %v1794_v43 }
 0x588   : > { %v1933_v48 = vpop.f32.mrf.mxu1  ;;  %v1811_v58 = vadd.f32 %v1808_v56, %v1672_v57 }
 0x589   : > { %v1946_v51 = vpop.f32.mrf.mxu0 }
 0x58a   : > { %v1948_v61 = vadd.f32 %v1945_v4, %v1811_v58 }
 0x58c   : > { %v1796_v54 = vpop.f32.mrf.mxu3 }
 0x58d   : > { %v1809_v55 = vpop.f32.mrf.mxu2 }
 0x594   : > { %v2081_v59 = vpop.f32.mrf.mxu3 }
 0x595   : > { %v2068_v60 = vpop.f32.mrf.mxu2 }
 0x596   : > { %v2082_v62 = vadd.f32 %v2081_v59, %v2068_v60 }
 0x598   : > { %v2085_v63 = vadd.f32 %v2082_v62, %v1948_v61 }
 0x59a   : > { %v2086_v0 = vpack.c.bf16 %v2085_v63, %v2085_v63 }
 0x59c   : > { %v2083_v1 = vpop.f32.mrf.mxu3  ;;  %2710 = vmatmul.msk.bf16.vlgmr.msra.gmra.mxu0 %vm795_vm11, %v2086_v0 }
 0x59d   : > { %v2070_v2 = vpop.f32.mrf.mxu2 }
 0x619   : > { %v2155_v5 = vpop.f32.mrf.mxu0 }
 0x61a   : > { %v2156_v6 = vadd.f32 %v2155_v5, %v2100_v3 }
 0x61c   : > { %v2160_v7 = vsel %vm2159_vm4, %v2156_v6, -inf }
 0x61d   : > { %2161 = vmax.xlane.f32.xlu2 %v2160_v7 }
 0x621   : > { %v2157_v8 = vpop.f32.mrf.mxu0 }
 0x690   : > { %v2162_v10 = vpop.xlane.xlu2 %2161 }
 0x691   : > { %v2163_v11 = vsub.f32 %v2156_v6, %v2162_v10 }
 0x693   : > { %v2164_v12 = vmul.f32 1.442695, %v2163_v11 }
 0x695   : > { %2887 = vpow2.f32 %v2164_v12 }
 0x69b   : > { %v2888_v13 = vpop.eup %2887 }
 0x69c   : > { %v2166_v50 = vsel %vm2159_vm4, %v2888_v13, 0.0 }
 0x69d   : > { %2167 = vadd.xlane.f32.xlu0 %v2166_v50 }
 0x710   : > { %v2168_v14 = vpop.xlane.xlu0 %2167 }
 0x711   : > { %2889 = vrcp.f32 %v2168_v14  ;;  %v2180_v16 = vand.u32 2147483648, %v2168_v14  ;;  %v2178_v17 = vand.u32 2147483647, %v2168_v14  ;;  %vm2174_vm5 = vweird.f32 %v2168_v14 }
 0x713   : > { %v2181_v40 = vor.u32 1.1754944e-38, %v2180_v16  ;;  %vm2179_vm7 = vcmp.eq.f32.partialorder %v2178_v17, 8.507059e+37 }
 0x717   : > { %v2890_v38 = vpop.eup %2889 }
 0x718   : > { %v2170_v47 = vmul.f32 %v2890_v38, %v2168_v14  ;;  %vm2175_vm11 = vweird.f32 %v2890_v38 }
 0x719   : > { %vm2176_vm6 = vmor %vm2174_vm5, %vm2175_vm11 }
 0x71a   : > { %v2171_v15 = vsub.f32 1.0, %v2170_v47 }
 0x71c   : > { %v2172_v52 = vmul.f32 %v2890_v38, %v2171_v15 }
 0x71e   : > { %v2173_v18 = vadd.f32 %v2890_v38, %v2172_v52 }
 0x720   : > { %v2177_v19 = vsel %vm2176_vm6, %v2890_v38, %v2173_v18 }
 0x721   : > { %v2182_v20 = vsel %vm2179_vm7, %v2181_v40, %v2177_v19 }
 0x722   : > { %v2183_v21 = vmul.f32 %v2888_v13, %v2182_v20 }
 0x724   : > { %2184 = vst.msk [vmem:[%s3192_s19] sm:$0x1] %vm2159_vm4, %v2183_v21 }
 0x725 PF: > { %s2194_s1 = scalar_lea.hbm %s3659_s13, %s2969_s28  ;;  %s2196_s0 = sshll.u32 %s3192_s19, 4  ;;  %s2197_s0 = int_to_ptr.vmem [resolvable:$true] %s2196_s0 }
 0x726   : > { %s2198_s29 = sshll.u32 %s2194_s1, 4  ;;  %s3684_s20 = sand.u32 1, %s2961_s26   ;;  %s2199_s29 = int_to_ptr.hbm [resolvable:$true] %s2198_s29 }
 0x727   : > { %s2186_s18 = scalar_lea.sflag [#allocation6], %s3684_s20  ;;  %s2905_s14 = sshra.s32 %s2199_s29, 4  ;;  %s2906_s14 = int_to_ptr.hbm [resolvable:$true] %s2905_s14 }
 0x728   : > { %s2907_s17 = scalar_lea.hbm %s2906_s14, 1  ;;  %s2911_s21 = scalar_lea.hbm %s3659_s13, 2 }
 0x729   : > { %p2908_p5 = scmp.ne.s32.totalorder %s2906_s14, %s2907_s17  ;;  %p2912_p9 = scmp.lt.s32.totalorder %s2906_s14, %s3659_s13 }
 0x72a   : > { %p2913_p10 = scmp.lt.s32.totalorder %s2911_s21, %s2907_s17 }
 0x72b   : > { %p2909_p6 = pnand %p2908_p5, %p3133_p3 }
 0x72c   : > { %p2914_p11 = por %p2913_p10, %p2912_p9 }
 0x72d   : > { %p2910_p7 = pneg %p2909_p6 }
 0x72f   : > { %p2915_p12 = pnand %p2914_p11, %p2910_p7 }
 0x731   : > { %2918 = shalt.err (!%p2915_p12)
}
 0x732   : > { %2787 = dma.vmem_to_hbm [thread:$0]  (%p3133_p3), %s2197_s0, 16, %s2199_s29, %s2186_s18  }
 0x733 PF: > { %p2793_p13 = scmp.ge.s32.totalorder %s2985_s15, 2  ;;  %s2210_s28 = sand.u32 1, %s2957_s25  }
 0x734   : > { %s2211_s2 = scalar_lea.sflag [#allocation6], %s2210_s28 }
 0x735   : > { %p2790_p0 = pnand %p2793_p13, %p3144_p8 }
 0x737   : > { %p2791_p1 = pneg %p2790_p0 }
 0x739   : > { %2952 = dma.done.wait (%p2791_p1), %s2211_s2, 16  }
 0x73a   : > { %2954 = vsyncadd (%p2791_p1), %s2211_s2, 4294967280  ;;  %s26_s15 = sadd.s32 1, %s2985_s15   ;;  %s3685_s28 = sld [smem:[#allocation8_spill]] }
 0x73b   : > { %p23_p2 = scmp.ge.s32.totalorder %s26_s15, 6   ;;  %s3686_s29 = sld [smem:[#allocation9_spill]] }
 0x73c   : > { %s3687_s30 = sld [smem:[#allocation10_spill]]  ;;  %s3689_s25 = smov %s2961_s26 }
 0x73d   : > { %s3688_s14 = sld [smem:[#allocation11_spill]]  ;;  %s3690_s26 = smov %s2965_s27 }
 0x73e   : > { %s3691_s27 = smov %s3142_s23  ;;  %25 = sbr.rel (!%p23_p2) target bundleno = 10 (0xa), region = 139 }
 0x743   :  { %2216 = vsyncpa [#allocation6], 1 }
 0x744   :  { %2218 = vsyncpa [#allocation6 + $0x1], 1 }

</bundles_post_ra>
